<compile_context>
chip_gen: v6e
topology: v6e:2x2x1
jax: 0.10.0
libtpu: 0.0.40
codegen_flags: <defaults>
</compile_context>

<pallas_src>
import functools

import jax
import jax.numpy as jnp
from jax.experimental import pallas as pl
from jax.experimental.pallas import tpu as pltpu

LN_EPS = 1e-5


def _vmem_limit_bytes():
    """Generation-aware scoped-VMEM budget (~80% of physical, capped at 100 MiB):
    ~51 MiB on v7x (64 MiB physical), 100 MiB on v5e/v6e (128 MiB physical)."""
    try:
        cap = int(pltpu.get_tpu_info().vmem_capacity_bytes)
        return min((cap * 4) // 5, 100 * 1024 * 1024)
    except Exception:
        return 64 * 1024 * 1024  # conservative fallback, safe on every generation


def _layer_norm(x, g, b):
    mu = jnp.mean(x, axis=-1, keepdims=True)
    var = jnp.mean((x - mu) ** 2, axis=-1, keepdims=True)
    return (x - mu) * jax.lax.rsqrt(var + LN_EPS) * g + b


STACK_KEYS = ('ln1_g', 'ln1_b', 'wq', 'bq', 'wk', 'bk', 'wv', 'bv',
              'wo', 'bo', 'ln2_g', 'ln2_b', 'w1', 'b1', 'w2', 'b2')


# --------------------------------------------------------------------------
# Fused kernel: patch embed + all encoder layers + head.
# --------------------------------------------------------------------------
def clip_vision_kernel(patches_ref, wp_ref, cls_ref, pos_ref, preg_ref, preb_ref,
                       ln1g_ref, ln1b_ref,
                       wq_ref, bq_ref, wk_ref, bk_ref, wv_ref, bv_ref,
                       wo_ref, bo_ref,
                       ln2g_ref, ln2b_ref,
                       w1_ref, b1_ref, w2_ref, b2_ref,
                       postg_ref, postb_ref, wproj_ref,
                       out_ref, hid_ref, *, num_heads, row_tile):
    l = pl.program_id(1)
    Bt, P, Dp = patches_ref.shape
    S, H = pos_ref.shape
    BS = Bt * S
    hd = H // num_heads
    scale = float(hd) ** -0.5

    # ---- step l == 0: patch-embed conv-as-matmul + CLS + pos + pre-LN ----
    # Fused here (no separate pallas_call) so the f32 hidden never bounces
    # through HBM; M = Bt*P rows in one matmul for MXU row utilization.
    @pl.when(l == 0)
    def _():
        pe = jnp.dot(patches_ref[...].reshape(Bt * P, Dp), wp_ref[...],
                     preferred_element_type=jnp.float32).reshape(Bt, P, H)
        cls = jnp.broadcast_to(cls_ref[...], (Bt, 1, H))
        tok = jnp.concatenate([cls, pe], axis=1) + pos_ref[...]
        tok = _layer_norm(tok, preg_ref[...], preb_ref[...])
        hid_ref[...] = tok.reshape(BS, H)

    # ---- encoder layer l (pre-LN transformer block) ----
    x = hid_ref[...]                                             # [BS, H] f32

    # self-attention
    h = _layer_norm(x, ln1g_ref[0], ln1b_ref[0]).astype(jnp.bfloat16)
    q = jnp.dot(h, wq_ref[0], preferred_element_type=jnp.float32) + bq_ref[0]
    k = jnp.dot(h, wk_ref[0], preferred_element_type=jnp.float32) + bk_ref[0]
    v = jnp.dot(h, wv_ref[0], preferred_element_type=jnp.float32) + bv_ref[0]
    # scale in f32, then cast q/k/v to bf16 exactly once (halves resident bytes,
    # removes the 3*NH per-head slice casts).
    q = (q * scale).reshape(Bt, S, H).astype(jnp.bfloat16)
    k = k.reshape(Bt, S, H).astype(jnp.bfloat16)
    v = v.reshape(Bt, S, H).astype(jnp.bfloat16)

    # Per-head scores/softmax/context; the contexts are gathered along the lane
    # axis so the output projection runs as ONE K=H matmul (full MXU K-fill)
    # instead of num_heads K=hd matmuls.
    # TODO(synk): at production S, chunk heads with lax.fori_loop over a
    # head-major VMEM ctx scratch to bound the live [S, S] score working set.
    ctx_heads = []
    for hi in range(num_heads):
        sl = slice(hi * hd, (hi + 1) * hd)
        s = jnp.einsum('bqd,bkd->bqk', q[:, :, sl], k[:, :, sl],
                       preferred_element_type=jnp.float32)       # [Bt, S, S]
        s = s - jnp.max(s, axis=-1, keepdims=True)
        p = jnp.exp(s)
        p = p / jnp.sum(p, axis=-1, keepdims=True)               # exact softmax
        ctx_heads.append(
            jnp.einsum('bqk,bkd->bqd', p.astype(jnp.bfloat16), v[:, :, sl],
                       preferred_element_type=jnp.float32).astype(jnp.bfloat16))
    ctx = jnp.concatenate(ctx_heads, axis=-1).reshape(BS, H)     # [BS, H] bf16
    attn = jnp.dot(ctx, wo_ref[0], preferred_element_type=jnp.float32) + bo_ref[0]
    x = x + attn

    # MLP (quick_gelu), row-tiled over BS so the [rows, I] f32 intermediate
    # stays bounded (keeps the fused stack inside v7x's 64 MiB VMEM at real dims).
    def _mlp(xr):
        hr = _layer_norm(xr, ln2g_ref[0], ln2b_ref[0]).astype(jnp.bfloat16)
        h1 = jnp.dot(hr, w1_ref[0], preferred_element_type=jnp.float32) + b1_ref[0]
        h1 = h1 * jax.nn.sigmoid(1.702 * h1)                     # quick_gelu
        h2 = jnp.dot(h1.astype(jnp.bfloat16), w2_ref[0],
                     preferred_element_type=jnp.float32) + b2_ref[0]
        return xr + h2

    n_chunks = BS // row_tile
    if n_chunks == 1:
        hid_ref[...] = _mlp(x)
    else:
        hid_ref[...] = x

        def _chunk(ci, carry):
            r0 = pl.multiple_of(ci * row_tile, row_tile)
            hid_ref[pl.ds(r0, row_tile), :] = _mlp(hid_ref[pl.ds(r0, row_tile), :])
            return carry

        jax.lax.fori_loop(0, n_chunks, _chunk, 0)

    # ---- final step: CLS pooling + post-LayerNorm + visual projection ----
    @pl.when(l == pl.num_programs(1) - 1)
    def _():
        xf = hid_ref[...].reshape(Bt, S, H)
        pooled = _layer_norm(xf[:, 0, :], postg_ref[...], postb_ref[...])
        out_ref[0] = jnp.dot(pooled.astype(jnp.bfloat16), wproj_ref[...],
                             preferred_element_type=jnp.float32)


def _pick_row_tile(bs, target=512):
    if bs <= target:
        return bs
    for t in range(target, 0, -1):
        if bs % t == 0:
            return t
    return bs


def clip_vision_forward(patches, params, *, num_heads, batch_tiles):
    B, P, Dp = patches.shape
    S, H = params['pos'].shape
    assert S == P + 1
    assert B % batch_tiles == 0
    Bt = B // batch_tiles
    stack = params['stack']
    L = stack['wq'].shape[0]
    PROJ = params['proj_w'].shape[1]
    row_tile = _pick_row_tile(Bt * S)
    weights = [stack[k] for k in STACK_KEYS]

    def const_spec(a):
        nd = a.ndim
        return pl.BlockSpec(a.shape, lambda bt, l, _n=nd: (0,) * _n)

    def layer_spec(a):
        nd = a.ndim
        return pl.BlockSpec((1,) + a.shape[1:],
                            lambda bt, l, _n=nd: (l,) + (0,) * (_n - 1))

    in_specs = [pl.BlockSpec((Bt, P, Dp), lambda bt, l: (bt, 0, 0)),
                const_spec(params['patch_w']),
                const_spec(params['cls']),
                const_spec(params['pos']),
                const_spec(params['pre_ln_g']),
                const_spec(params['pre_ln_b'])]
    in_specs += [layer_spec(w) for w in weights]
    in_specs += [const_spec(params['post_ln_g']),
                 const_spec(params['post_ln_b']),
                 const_spec(params['proj_w'])]

    kernel = functools.partial(clip_vision_kernel,
                               num_heads=num_heads, row_tile=row_tile)
    out = pl.pallas_call(
        kernel,
        out_shape=jax.ShapeDtypeStruct((batch_tiles, Bt, PROJ), jnp.float32),
        grid=(batch_tiles, L),
        in_specs=in_specs,
        out_specs=pl.BlockSpec((1, Bt, PROJ), lambda bt, l: (bt, 0, 0)),
        scratch_shapes=[pltpu.VMEM((Bt * S, H), jnp.float32)],
        compiler_params=pltpu.CompilerParams(
            # batch tiles shard across cores (uses v7x's 2nd TensorCore);
            # the layer axis is a sequential carry over the resident scratch.
            dimension_semantics=("parallel", "arbitrary"),
            vmem_limit_bytes=_vmem_limit_bytes(),
        ),
    )(patches, params['patch_w'], params['cls'], params['pos'],
      params['pre_ln_g'], params['pre_ln_b'],
      *weights,
      params['post_ln_g'], params['post_ln_b'], params['proj_w'])
    return out.reshape(B, PROJ)


# --------------------------------------------------------------------------
# Glue + parameter init
# --------------------------------------------------------------------------
def extract_patches(x, patch, dtype=jnp.bfloat16):
    """NCHW -> [B, num_patches, C*ph*pw] (bf16), patches in row-major (gh, gw)
    order, per-patch flattening order (C, ph, pw) — matches Conv2d weight flatten."""
    B, C, Hh, Ww = x.shape
    gh, gw = Hh // patch, Ww // patch
    p = x.reshape(B, C, gh, patch, gw, patch)
    p = p.transpose(0, 2, 4, 1, 3, 5)                           # [B,gh,gw,C,ph,pw]
    return p.reshape(B, gh * gw, C * patch * patch).astype(dtype)


def init_params(key, *, C, patch, H, NH, I, L, S, PROJ):
    bf16, f32 = jnp.bfloat16, jnp.float32

    def nrm(k, shape, dtype, scale=0.02):
        return (scale * jax.random.normal(k, shape, f32)).astype(dtype)

    ks = iter(jax.random.split(key, 16))
    params = {
        # Conv2d(C, H, kernel=patch, stride=patch, bias=False) weight,
        # flattened to [C*ph*pw, H] (already transposed to [in, out]), bf16.
        'patch_w': nrm(next(ks), (C * patch * patch, H), bf16),
        'cls': nrm(next(ks), (1, H), f32),
        'pos': nrm(next(ks), (S, H), f32),
        'pre_ln_g': jnp.ones((1, H), f32),
        'pre_ln_b': jnp.zeros((1, H), f32),
        'post_ln_g': jnp.ones((1, H), f32),
        'post_ln_b': jnp.zeros((1, H), f32),
        'proj_w': nrm(next(ks), (H, PROJ), bf16),
    }
    # Per-layer weights stacked along a leading L axis for streaming.
    params['stack'] = {
        'ln1_g': jnp.ones((L, 1, H), f32), 'ln1_b': jnp.zeros((L, 1, H), f32),
        'wq': nrm(next(ks), (L, H, H), bf16), 'bq': jnp.zeros((L, 1, H), f32),
        'wk': nrm(next(ks), (L, H, H), bf16), 'bk': jnp.zeros((L, 1, H), f32),
        'wv': nrm(next(ks), (L, H, H), bf16), 'bv': jnp.zeros((L, 1, H), f32),
        'wo': nrm(next(ks), (L, H, H), bf16), 'bo': jnp.zeros((L, 1, H), f32),
        'ln2_g': jnp.ones((L, 1, H), f32), 'ln2_b': jnp.zeros((L, 1, H), f32),
        'w1': nrm(next(ks), (L, H, I), bf16), 'b1': jnp.zeros((L, 1, I), f32),
        'w2': nrm(next(ks), (L, I, H), bf16), 'b2': jnp.zeros((L, 1, H), f32),
    }
    return params


def image_encoder_forward(x, params, *, patch, num_heads, batch_tiles=None):
    patches = extract_patches(x, patch)                          # plain-JAX glue
    B = x.shape[0]
    if batch_tiles is None:
        batch_tiles = 2 if B % 2 == 0 else 1
    return clip_vision_forward(patches, params, num_heads=num_heads,
                               batch_tiles=batch_tiles)


if __name__ == "__main__":
    # Small, CLIP-vision-shaped config.
    B, C, IMG, PATCH = 2, 3, 16, 8          # -> 4 patches + CLS = 5 tokens
    H, NH, I, L, PROJ = 32, 4, 64, 2, 16
    S = (IMG // PATCH) ** 2 + 1

    key = jax.random.PRNGKey(0)
    k_x, k_p = jax.random.split(key)
    x = jax.random.normal(k_x, (B, C, IMG, IMG), jnp.float32)
    params = init_params(k_p, C=C, patch=PATCH, H=H, NH=NH, I=I, L=L, S=S, PROJ=PROJ)

    out = image_encoder_forward(x, params, patch=PATCH, num_heads=NH)
    out = jax.block_until_ready(out)
    assert out.shape == (B, PROJ) and out.dtype == jnp.float32
    print("KERNEL_OK")
</pallas_src>

<mosaic_0001>
module attributes {stable_mosaic.version = 11 : i64} {
  func.func @clip_vision_kernel(%arg0: i32, %arg1: i32, %arg2: memref<1x4x192xbf16, #tpu.memory_space<vmem>>, %arg3: memref<192x32xbf16, #tpu.memory_space<vmem>>, %arg4: memref<1x32xf32, #tpu.memory_space<vmem>>, %arg5: memref<5x32xf32, #tpu.memory_space<vmem>>, %arg6: memref<1x32xf32, #tpu.memory_space<vmem>>, %arg7: memref<1x32xf32, #tpu.memory_space<vmem>>, %arg8: memref<1x1x32xf32, #tpu.memory_space<vmem>>, %arg9: memref<1x1x32xf32, #tpu.memory_space<vmem>>, %arg10: memref<1x32x32xbf16, #tpu.memory_space<vmem>>, %arg11: memref<1x1x32xf32, #tpu.memory_space<vmem>>, %arg12: memref<1x32x32xbf16, #tpu.memory_space<vmem>>, %arg13: memref<1x1x32xf32, #tpu.memory_space<vmem>>, %arg14: memref<1x32x32xbf16, #tpu.memory_space<vmem>>, %arg15: memref<1x1x32xf32, #tpu.memory_space<vmem>>, %arg16: memref<1x32x32xbf16, #tpu.memory_space<vmem>>, %arg17: memref<1x1x32xf32, #tpu.memory_space<vmem>>, %arg18: memref<1x1x32xf32, #tpu.memory_space<vmem>>, %arg19: memref<1x1x32xf32, #tpu.memory_space<vmem>>, %arg20: memref<1x32x64xbf16, #tpu.memory_space<vmem>>, %arg21: memref<1x1x64xf32, #tpu.memory_space<vmem>>, %arg22: memref<1x64x32xbf16, #tpu.memory_space<vmem>>, %arg23: memref<1x1x32xf32, #tpu.memory_space<vmem>>, %arg24: memref<1x32xf32, #tpu.memory_space<vmem>>, %arg25: memref<1x32xf32, #tpu.memory_space<vmem>>, %arg26: memref<32x16xbf16, #tpu.memory_space<vmem>>, %arg27: memref<1x1x16xf32, #tpu.memory_space<vmem>>, %arg28: memref<5x32xf32, #tpu.memory_space<vmem>>) attributes {dimension_semantics = [#tpu.dimension_semantics<parallel>, #tpu.dimension_semantics<arbitrary>], iteration_bounds = array<i64: 2, 2>, scalar_prefetch = 0 : i64, scratch_operands = 1 : i64, tpu.core_type = #tpu.core_type<tc>, window_params = [{transform_indices = @transform_0, window_bounds = array<i64: 1, 4, 192>}, {pipeline_mode = #tpu.pipeline_mode<synchronous>, transform_indices = @transform_1, window_bounds = array<i64: 192, 32>}, {pipeline_mode = #tpu.pipeline_mode<synchronous>, transform_indices = @transform_2, window_bounds = array<i64: 1, 32>}, {pipeline_mode = #tpu.pipeline_mode<synchronous>, transform_indices = @transform_3, window_bounds = array<i64: 5, 32>}, {pipeline_mode = #tpu.pipeline_mode<synchronous>, transform_indices = @transform_4, window_bounds = array<i64: 1, 32>}, {pipeline_mode = #tpu.pipeline_mode<synchronous>, transform_indices = @transform_5, window_bounds = array<i64: 1, 32>}, {transform_indices = @transform_6, window_bounds = array<i64: 1, 1, 32>}, {transform_indices = @transform_7, window_bounds = array<i64: 1, 1, 32>}, {transform_indices = @transform_8, window_bounds = array<i64: 1, 32, 32>}, {transform_indices = @transform_9, window_bounds = array<i64: 1, 1, 32>}, {transform_indices = @transform_10, window_bounds = array<i64: 1, 32, 32>}, {transform_indices = @transform_11, window_bounds = array<i64: 1, 1, 32>}, {transform_indices = @transform_12, window_bounds = array<i64: 1, 32, 32>}, {transform_indices = @transform_13, window_bounds = array<i64: 1, 1, 32>}, {transform_indices = @transform_14, window_bounds = array<i64: 1, 32, 32>}, {transform_indices = @transform_15, window_bounds = array<i64: 1, 1, 32>}, {transform_indices = @transform_16, window_bounds = array<i64: 1, 1, 32>}, {transform_indices = @transform_17, window_bounds = array<i64: 1, 1, 32>}, {transform_indices = @transform_18, window_bounds = array<i64: 1, 32, 64>}, {transform_indices = @transform_19, window_bounds = array<i64: 1, 1, 64>}, {transform_indices = @transform_20, window_bounds = array<i64: 1, 64, 32>}, {transform_indices = @transform_21, window_bounds = array<i64: 1, 1, 32>}, {pipeline_mode = #tpu.pipeline_mode<synchronous>, transform_indices = @transform_22, window_bounds = array<i64: 1, 32>}, {pipeline_mode = #tpu.pipeline_mode<synchronous>, transform_indices = @transform_23, window_bounds = array<i64: 1, 32>}, {pipeline_mode = #tpu.pipeline_mode<synchronous>, transform_indices = @transform_24, window_bounds = array<i64: 32, 16>}, {transform_indices = @transform_25, window_bounds = array<i64: 1, 1, 16>}]} {
    %c0_i32 = arith.constant 0 : i32
    %0 = arith.cmpi eq, %arg1, %c0_i32 : i32
    %1 = arith.extui %0 : i1 to i32
    %c0_i32_0 = arith.constant 0 : i32
    %2 = arith.cmpi ne, %1, %c0_i32_0 : i32
    scf.if %2 {
      %c0_87 = arith.constant 0 : index
      %c0_88 = arith.constant 0 : index
      %c0_89 = arith.constant 0 : index
      %189 = vector.load %arg2[%c0_87, %c0_88, %c0_89] : memref<1x4x192xbf16, #tpu.memory_space<vmem>>, vector<1x4x192xbf16>
      %190 = vector.shape_cast %189 : vector<1x4x192xbf16> to vector<4x192xbf16>
      %c0_90 = arith.constant 0 : index
      %c0_91 = arith.constant 0 : index
      %191 = vector.load %arg3[%c0_90, %c0_91] : memref<192x32xbf16, #tpu.memory_space<vmem>>, vector<192x32xbf16>
      %cst_92 = arith.constant dense<0.000000e+00> : vector<4x32xf32>
      %192 = tpu.matmul %190, %191, %cst_92 {dimension_numbers = #tpu.dot_dimension_numbers<[1], [0], [0], [1], [0, 0, 1, 1], [], []>} : vector<4x192xbf16>, vector<192x32xbf16>, vector<4x32xf32> -> vector<4x32xf32>
      %193 = vector.shape_cast %192 : vector<4x32xf32> to vector<1x4x32xf32>
      %c0_93 = arith.constant 0 : index
      %c0_94 = arith.constant 0 : index
      %194 = vector.load %arg4[%c0_93, %c0_94] : memref<1x32xf32, #tpu.memory_space<vmem>>, vector<1x32xf32>
      %195 = vector.shape_cast %194 : vector<1x32xf32> to vector<1x1x32xf32>
      %196 = tpu.concatenate %195, %193 in 1 : vector<1x1x32xf32>, vector<1x4x32xf32> -> vector<1x5x32xf32>
      %c0_95 = arith.constant 0 : index
      %c0_96 = arith.constant 0 : index
      %197 = vector.load %arg5[%c0_95, %c0_96] : memref<5x32xf32, #tpu.memory_space<vmem>>, vector<5x32xf32>
      %198 = vector.shape_cast %197 : vector<5x32xf32> to vector<1x5x32xf32>
      %199 = arith.addf %196, %198 : vector<1x5x32xf32>
      %c0_97 = arith.constant 0 : index
      %c0_98 = arith.constant 0 : index
      %200 = vector.load %arg6[%c0_97, %c0_98] : memref<1x32xf32, #tpu.memory_space<vmem>>, vector<1x32xf32>
      %c0_99 = arith.constant 0 : index
      %c0_100 = arith.constant 0 : index
      %201 = vector.load %arg7[%c0_99, %c0_100] : memref<1x32xf32, #tpu.memory_space<vmem>>, vector<1x32xf32>
      %cst_101 = arith.constant dense<0.000000e+00> : vector<1x5xf32>
      %202 = vector.multi_reduction <add>, %199, %cst_101 [2] : vector<1x5x32xf32> to vector<1x5xf32>
      %203 = vector.shape_cast %202 : vector<1x5xf32> to vector<1x5x1xf32>
      %cst_102 = arith.constant 3.200000e+01 : f32
      %204 = vector.broadcast %cst_102 : f32 to vector<1x5x1xf32>
      %205 = arith.divf %203, %204 : vector<1x5x1xf32>
      %206 = vector.broadcast %205 : vector<1x5x1xf32> to vector<1x5x32xf32>
      %207 = arith.subf %199, %206 : vector<1x5x32xf32>
      %208 = arith.mulf %207, %207 : vector<1x5x32xf32>
      %cst_103 = arith.constant dense<0.000000e+00> : vector<1x5xf32>
      %209 = vector.multi_reduction <add>, %208, %cst_103 [2] : vector<1x5x32xf32> to vector<1x5xf32>
      %210 = vector.shape_cast %209 : vector<1x5xf32> to vector<1x5x1xf32>
      %cst_104 = arith.constant 3.200000e+01 : f32
      %211 = vector.broadcast %cst_104 : f32 to vector<1x5x1xf32>
      %212 = arith.divf %210, %211 : vector<1x5x1xf32>
      %213 = vector.broadcast %205 : vector<1x5x1xf32> to vector<1x5x32xf32>
      %214 = arith.subf %199, %213 : vector<1x5x32xf32>
      %cst_105 = arith.constant 9.99999974E-6 : f32
      %215 = vector.broadcast %cst_105 : f32 to vector<1x5x1xf32>
      %216 = arith.addf %212, %215 : vector<1x5x1xf32>
      %217 = math.rsqrt %216 : vector<1x5x1xf32>
      %218 = vector.broadcast %217 : vector<1x5x1xf32> to vector<1x5x32xf32>
      %219 = arith.mulf %214, %218 : vector<1x5x32xf32>
      %220 = vector.shape_cast %200 : vector<1x32xf32> to vector<1x1x32xf32>
      %221 = vector.broadcast %220 : vector<1x1x32xf32> to vector<1x5x32xf32>
      %222 = arith.mulf %219, %221 : vector<1x5x32xf32>
      %223 = vector.shape_cast %201 : vector<1x32xf32> to vector<1x1x32xf32>
      %224 = vector.broadcast %223 : vector<1x1x32xf32> to vector<1x5x32xf32>
      %225 = arith.addf %222, %224 : vector<1x5x32xf32>
      %226 = vector.shape_cast %225 : vector<1x5x32xf32> to vector<5x32xf32>
      %c0_106 = arith.constant 0 : index
      %c0_107 = arith.constant 0 : index
      %227 = vector.load %arg28[%c0_106, %c0_107] : memref<5x32xf32, #tpu.memory_space<vmem>>, vector<5x32xf32>
      tpu.vector_store %arg28[%c0_106, %c0_107], %226 {strides = array<i32>} : memref<5x32xf32, #tpu.memory_space<vmem>>, vector<5x32xf32>,
    } else {
    }
    %c0 = arith.constant 0 : index
    %c0_1 = arith.constant 0 : index
    %3 = vector.load %arg28[%c0, %c0_1] : memref<5x32xf32, #tpu.memory_space<vmem>>, vector<5x32xf32>
    %c0_2 = arith.constant 0 : index
    %c0_3 = arith.constant 0 : index
    %c0_4 = arith.constant 0 : index
    %4 = vector.load %arg8[%c0_2, %c0_3, %c0_4] : memref<1x1x32xf32, #tpu.memory_space<vmem>>, vector<1x1x32xf32>
    %5 = vector.shape_cast %4 : vector<1x1x32xf32> to vector<1x32xf32>
    %c0_5 = arith.constant 0 : index
    %c0_6 = arith.constant 0 : index
    %c0_7 = arith.constant 0 : index
    %6 = vector.load %arg9[%c0_5, %c0_6, %c0_7] : memref<1x1x32xf32, #tpu.memory_space<vmem>>, vector<1x1x32xf32>
    %7 = vector.shape_cast %6 : vector<1x1x32xf32> to vector<1x32xf32>
    %cst = arith.constant dense<0.000000e+00> : vector<5xf32>
    %8 = vector.multi_reduction <add>, %3, %cst [1] : vector<5x32xf32> to vector<5xf32>
    %9 = vector.shape_cast %8 : vector<5xf32> to vector<5x1xf32>
    %cst_8 = arith.constant 3.200000e+01 : f32
    %10 = vector.broadcast %cst_8 : f32 to vector<5x1xf32>
    %11 = arith.divf %9, %10 : vector<5x1xf32>
    %12 = vector.broadcast %11 : vector<5x1xf32> to vector<5x32xf32>
    %13 = arith.subf %3, %12 : vector<5x32xf32>
    %14 = arith.mulf %13, %13 : vector<5x32xf32>
    %cst_9 = arith.constant dense<0.000000e+00> : vector<5xf32>
    %15 = vector.multi_reduction <add>, %14, %cst_9 [1] : vector<5x32xf32> to vector<5xf32>
    %16 = vector.shape_cast %15 : vector<5xf32> to vector<5x1xf32>
    %cst_10 = arith.constant 3.200000e+01 : f32
    %17 = vector.broadcast %cst_10 : f32 to vector<5x1xf32>
    %18 = arith.divf %16, %17 : vector<5x1xf32>
    %19 = vector.broadcast %11 : vector<5x1xf32> to vector<5x32xf32>
    %20 = arith.subf %3, %19 : vector<5x32xf32>
    %cst_11 = arith.constant 9.99999974E-6 : f32
    %21 = vector.broadcast %cst_11 : f32 to vector<5x1xf32>
    %22 = arith.addf %18, %21 : vector<5x1xf32>
    %23 = math.rsqrt %22 : vector<5x1xf32>
    %24 = vector.broadcast %23 : vector<5x1xf32> to vector<5x32xf32>
    %25 = arith.mulf %20, %24 : vector<5x32xf32>
    %26 = vector.broadcast %5 : vector<1x32xf32> to vector<5x32xf32>
    %27 = arith.mulf %25, %26 : vector<5x32xf32>
    %28 = vector.broadcast %7 : vector<1x32xf32> to vector<5x32xf32>
    %29 = arith.addf %27, %28 : vector<5x32xf32>
    %30 = arith.truncf %29 : vector<5x32xf32> to vector<5x32xbf16>
    %c0_12 = arith.constant 0 : index
    %c0_13 = arith.constant 0 : index
    %c0_14 = arith.constant 0 : index
    %31 = vector.load %arg10[%c0_12, %c0_13, %c0_14] : memref<1x32x32xbf16, #tpu.memory_space<vmem>>, vector<1x32x32xbf16>
    %32 = vector.shape_cast %31 : vector<1x32x32xbf16> to vector<32x32xbf16>
    %cst_15 = arith.constant dense<0.000000e+00> : vector<5x32xf32>
    %33 = tpu.matmul %30, %32, %cst_15 {dimension_numbers = #tpu.dot_dimension_numbers<[1], [0], [0], [1], [0, 0, 1, 1], [], []>} : vector<5x32xbf16>, vector<32x32xbf16>, vector<5x32xf32> -> vector<5x32xf32>
    %c0_16 = arith.constant 0 : index
    %c0_17 = arith.constant 0 : index
    %c0_18 = arith.constant 0 : index
    %34 = vector.load %arg11[%c0_16, %c0_17, %c0_18] : memref<1x1x32xf32, #tpu.memory_space<vmem>>, vector<1x1x32xf32>
    %35 = vector.shape_cast %34 : vector<1x1x32xf32> to vector<1x32xf32>
    %36 = vector.broadcast %35 : vector<1x32xf32> to vector<5x32xf32>
    %37 = arith.addf %33, %36 : vector<5x32xf32>
    %c0_19 = arith.constant 0 : index
    %c0_20 = arith.constant 0 : index
    %c0_21 = arith.constant 0 : index
    %38 = vector.load %arg12[%c0_19, %c0_20, %c0_21] : memref<1x32x32xbf16, #tpu.memory_space<vmem>>, vector<1x32x32xbf16>
    %39 = vector.shape_cast %38 : vector<1x32x32xbf16> to vector<32x32xbf16>
    %cst_22 = arith.constant dense<0.000000e+00> : vector<5x32xf32>
    %40 = tpu.matmul %30, %39, %cst_22 {dimension_numbers = #tpu.dot_dimension_numbers<[1], [0], [0], [1], [0, 0, 1, 1], [], []>} : vector<5x32xbf16>, vector<32x32xbf16>, vector<5x32xf32> -> vector<5x32xf32>
    %c0_23 = arith.constant 0 : index
    %c0_24 = arith.constant 0 : index
    %c0_25 = arith.constant 0 : index
    %41 = vector.load %arg13[%c0_23, %c0_24, %c0_25] : memref<1x1x32xf32, #tpu.memory_space<vmem>>, vector<1x1x32xf32>
    %42 = vector.shape_cast %41 : vector<1x1x32xf32> to vector<1x32xf32>
    %43 = vector.broadcast %42 : vector<1x32xf32> to vector<5x32xf32>
    %44 = arith.addf %40, %43 : vector<5x32xf32>
    %c0_26 = arith.constant 0 : index
    %c0_27 = arith.constant 0 : index
    %c0_28 = arith.constant 0 : index
    %45 = vector.load %arg14[%c0_26, %c0_27, %c0_28] : memref<1x32x32xbf16, #tpu.memory_space<vmem>>, vector<1x32x32xbf16>
    %46 = vector.shape_cast %45 : vector<1x32x32xbf16> to vector<32x32xbf16>
    %cst_29 = arith.constant dense<0.000000e+00> : vector<5x32xf32>
    %47 = tpu.matmul %30, %46, %cst_29 {dimension_numbers = #tpu.dot_dimension_numbers<[1], [0], [0], [1], [0, 0, 1, 1], [], []>} : vector<5x32xbf16>, vector<32x32xbf16>, vector<5x32xf32> -> vector<5x32xf32>
    %c0_30 = arith.constant 0 : index
    %c0_31 = arith.constant 0 : index
    %c0_32 = arith.constant 0 : index
    %48 = vector.load %arg15[%c0_30, %c0_31, %c0_32] : memref<1x1x32xf32, #tpu.memory_space<vmem>>, vector<1x1x32xf32>
    %49 = vector.shape_cast %48 : vector<1x1x32xf32> to vector<1x32xf32>
    %50 = vector.broadcast %49 : vector<1x32xf32> to vector<5x32xf32>
    %51 = arith.addf %47, %50 : vector<5x32xf32>
    %cst_33 = arith.constant 0.353553385 : f32
    %52 = vector.broadcast %cst_33 : f32 to vector<5x32xf32>
    %53 = arith.mulf %37, %52 : vector<5x32xf32>
    %54 = vector.shape_cast %53 : vector<5x32xf32> to vector<1x5x32xf32>
    %55 = arith.truncf %54 : vector<1x5x32xf32> to vector<1x5x32xbf16>
    %56 = vector.shape_cast %44 : vector<5x32xf32> to vector<1x5x32xf32>
    %57 = arith.truncf %56 : vector<1x5x32xf32> to vector<1x5x32xbf16>
    %58 = vector.shape_cast %51 : vector<5x32xf32> to vector<1x5x32xf32>
    %59 = arith.truncf %58 : vector<1x5x32xf32> to vector<1x5x32xbf16>
    %60 = vector.extract_strided_slice %55 {offsets = [0, 0, 0], sizes = [1, 5, 8], strides = [1, 1, 1]} : vector<1x5x32xbf16> to vector<1x5x8xbf16>
    %61 = vector.extract_strided_slice %57 {offsets = [0, 0, 0], sizes = [1, 5, 8], strides = [1, 1, 1]} : vector<1x5x32xbf16> to vector<1x5x8xbf16>
    "tpu.trace_start"() <{level = 10 : i32, message = "bqd,bkd->bqk"}> : () -> ()
    %cst_34 = arith.constant dense<0.000000e+00> : vector<1x5x5xf32>
    %62 = tpu.matmul %60, %61, %cst_34 {dimension_numbers = #tpu.dot_dimension_numbers<[2], [2], [1], [1], [0, 0, 0, 1, 1, 1], [0], [0]>} : vector<1x5x8xbf16>, vector<1x5x8xbf16>, vector<1x5x5xf32> -> vector<1x5x5xf32>
    "tpu.trace_stop"() : () -> ()
    %cst_35 = arith.constant dense<0xFF800000> : vector<1x5xf32>
    %63 = vector.multi_reduction <maximumf>, %62, %cst_35 [2] : vector<1x5x5xf32> to vector<1x5xf32>
    %64 = vector.shape_cast %63 : vector<1x5xf32> to vector<1x5x1xf32>
    %65 = vector.broadcast %64 : vector<1x5x1xf32> to vector<1x5x5xf32>
    %66 = arith.subf %62, %65 : vector<1x5x5xf32>
    %67 = math.exp %66 : vector<1x5x5xf32>
    %cst_36 = arith.constant dense<0.000000e+00> : vector<1x5xf32>
    %68 = vector.multi_reduction <add>, %67, %cst_36 [2] : vector<1x5x5xf32> to vector<1x5xf32>
    %69 = vector.shape_cast %68 : vector<1x5xf32> to vector<1x5x1xf32>
    %70 = vector.broadcast %69 : vector<1x5x1xf32> to vector<1x5x5xf32>
    %71 = arith.divf %67, %70 : vector<1x5x5xf32>
    %72 = arith.truncf %71 : vector<1x5x5xf32> to vector<1x5x5xbf16>
    %73 = vector.extract_strided_slice %59 {offsets = [0, 0, 0], sizes = [1, 5, 8], strides = [1, 1, 1]} : vector<1x5x32xbf16> to vector<1x5x8xbf16>
    "tpu.trace_start"() <{level = 10 : i32, message = "bqk,bkd->bqd"}> : () -> ()
    %cst_37 = arith.constant dense<0.000000e+00> : vector<1x5x8xf32>
    %74 = tpu.matmul %72, %73, %cst_37 {dimension_numbers = #tpu.dot_dimension_numbers<[2], [1], [1], [2], [0, 0, 0, 1, 1, 2], [0], [0]>} : vector<1x5x5xbf16>, vector<1x5x8xbf16>, vector<1x5x8xf32> -> vector<1x5x8xf32>
    "tpu.trace_stop"() : () -> ()
    %75 = arith.truncf %74 : vector<1x5x8xf32> to vector<1x5x8xbf16>
    %76 = vector.extract_strided_slice %55 {offsets = [0, 0, 8], sizes = [1, 5, 8], strides = [1, 1, 1]} : vector<1x5x32xbf16> to vector<1x5x8xbf16>
    %77 = vector.extract_strided_slice %57 {offsets = [0, 0, 8], sizes = [1, 5, 8], strides = [1, 1, 1]} : vector<1x5x32xbf16> to vector<1x5x8xbf16>
    "tpu.trace_start"() <{level = 10 : i32, message = "bqd,bkd->bqk"}> : () -> ()
    %cst_38 = arith.constant dense<0.000000e+00> : vector<1x5x5xf32>
    %78 = tpu.matmul %76, %77, %cst_38 {dimension_numbers = #tpu.dot_dimension_numbers<[2], [2], [1], [1], [0, 0, 0, 1, 1, 1], [0], [0]>} : vector<1x5x8xbf16>, vector<1x5x8xbf16>, vector<1x5x5xf32> -> vector<1x5x5xf32>
    "tpu.trace_stop"() : () -> ()
    %cst_39 = arith.constant dense<0xFF800000> : vector<1x5xf32>
    %79 = vector.multi_reduction <maximumf>, %78, %cst_39 [2] : vector<1x5x5xf32> to vector<1x5xf32>
    %80 = vector.shape_cast %79 : vector<1x5xf32> to vector<1x5x1xf32>
    %81 = vector.broadcast %80 : vector<1x5x1xf32> to vector<1x5x5xf32>
    %82 = arith.subf %78, %81 : vector<1x5x5xf32>
    %83 = math.exp %82 : vector<1x5x5xf32>
    %cst_40 = arith.constant dense<0.000000e+00> : vector<1x5xf32>
    %84 = vector.multi_reduction <add>, %83, %cst_40 [2] : vector<1x5x5xf32> to vector<1x5xf32>
    %85 = vector.shape_cast %84 : vector<1x5xf32> to vector<1x5x1xf32>
    %86 = vector.broadcast %85 : vector<1x5x1xf32> to vector<1x5x5xf32>
    %87 = arith.divf %83, %86 : vector<1x5x5xf32>
    %88 = arith.truncf %87 : vector<1x5x5xf32> to vector<1x5x5xbf16>
    %89 = vector.extract_strided_slice %59 {offsets = [0, 0, 8], sizes = [1, 5, 8], strides = [1, 1, 1]} : vector<1x5x32xbf16> to vector<1x5x8xbf16>
    "tpu.trace_start"() <{level = 10 : i32, message = "bqk,bkd->bqd"}> : () -> ()
    %cst_41 = arith.constant dense<0.000000e+00> : vector<1x5x8xf32>
    %90 = tpu.matmul %88, %89, %cst_41 {dimension_numbers = #tpu.dot_dimension_numbers<[2], [1], [1], [2], [0, 0, 0, 1, 1, 2], [0], [0]>} : vector<1x5x5xbf16>, vector<1x5x8xbf16>, vector<1x5x8xf32> -> vector<1x5x8xf32>
    "tpu.trace_stop"() : () -> ()
    %91 = arith.truncf %90 : vector<1x5x8xf32> to vector<1x5x8xbf16>
    %92 = vector.extract_strided_slice %55 {offsets = [0, 0, 16], sizes = [1, 5, 8], strides = [1, 1, 1]} : vector<1x5x32xbf16> to vector<1x5x8xbf16>
    %93 = vector.extract_strided_slice %57 {offsets = [0, 0, 16], sizes = [1, 5, 8], strides = [1, 1, 1]} : vector<1x5x32xbf16> to vector<1x5x8xbf16>
    "tpu.trace_start"() <{level = 10 : i32, message = "bqd,bkd->bqk"}> : () -> ()
    %cst_42 = arith.constant dense<0.000000e+00> : vector<1x5x5xf32>
    %94 = tpu.matmul %92, %93, %cst_42 {dimension_numbers = #tpu.dot_dimension_numbers<[2], [2], [1], [1], [0, 0, 0, 1, 1, 1], [0], [0]>} : vector<1x5x8xbf16>, vector<1x5x8xbf16>, vector<1x5x5xf32> -> vector<1x5x5xf32>
    "tpu.trace_stop"() : () -> ()
    %cst_43 = arith.constant dense<0xFF800000> : vector<1x5xf32>
    %95 = vector.multi_reduction <maximumf>, %94, %cst_43 [2] : vector<1x5x5xf32> to vector<1x5xf32>
    %96 = vector.shape_cast %95 : vector<1x5xf32> to vector<1x5x1xf32>
    %97 = vector.broadcast %96 : vector<1x5x1xf32> to vector<1x5x5xf32>
    %98 = arith.subf %94, %97 : vector<1x5x5xf32>
    %99 = math.exp %98 : vector<1x5x5xf32>
    %cst_44 = arith.constant dense<0.000000e+00> : vector<1x5xf32>
    %100 = vector.multi_reduction <add>, %99, %cst_44 [2] : vector<1x5x5xf32> to vector<1x5xf32>
    %101 = vector.shape_cast %100 : vector<1x5xf32> to vector<1x5x1xf32>
    %102 = vector.broadcast %101 : vector<1x5x1xf32> to vector<1x5x5xf32>
    %103 = arith.divf %99, %102 : vector<1x5x5xf32>
    %104 = arith.truncf %103 : vector<1x5x5xf32> to vector<1x5x5xbf16>
    %105 = vector.extract_strided_slice %59 {offsets = [0, 0, 16], sizes = [1, 5, 8], strides = [1, 1, 1]} : vector<1x5x32xbf16> to vector<1x5x8xbf16>
    "tpu.trace_start"() <{level = 10 : i32, message = "bqk,bkd->bqd"}> : () -> ()
    %cst_45 = arith.constant dense<0.000000e+00> : vector<1x5x8xf32>
    %106 = tpu.matmul %104, %105, %cst_45 {dimension_numbers = #tpu.dot_dimension_numbers<[2], [1], [1], [2], [0, 0, 0, 1, 1, 2], [0], [0]>} : vector<1x5x5xbf16>, vector<1x5x8xbf16>, vector<1x5x8xf32> -> vector<1x5x8xf32>
    "tpu.trace_stop"() : () -> ()
    %107 = arith.truncf %106 : vector<1x5x8xf32> to vector<1x5x8xbf16>
    %108 = vector.extract_strided_slice %55 {offsets = [0, 0, 24], sizes = [1, 5, 8], strides = [1, 1, 1]} : vector<1x5x32xbf16> to vector<1x5x8xbf16>
    %109 = vector.extract_strided_slice %57 {offsets = [0, 0, 24], sizes = [1, 5, 8], strides = [1, 1, 1]} : vector<1x5x32xbf16> to vector<1x5x8xbf16>
    "tpu.trace_start"() <{level = 10 : i32, message = "bqd,bkd->bqk"}> : () -> ()
    %cst_46 = arith.constant dense<0.000000e+00> : vector<1x5x5xf32>
    %110 = tpu.matmul %108, %109, %cst_46 {dimension_numbers = #tpu.dot_dimension_numbers<[2], [2], [1], [1], [0, 0, 0, 1, 1, 1], [0], [0]>} : vector<1x5x8xbf16>, vector<1x5x8xbf16>, vector<1x5x5xf32> -> vector<1x5x5xf32>
    "tpu.trace_stop"() : () -> ()
    %cst_47 = arith.constant dense<0xFF800000> : vector<1x5xf32>
    %111 = vector.multi_reduction <maximumf>, %110, %cst_47 [2] : vector<1x5x5xf32> to vector<1x5xf32>
    %112 = vector.shape_cast %111 : vector<1x5xf32> to vector<1x5x1xf32>
    %113 = vector.broadcast %112 : vector<1x5x1xf32> to vector<1x5x5xf32>
    %114 = arith.subf %110, %113 : vector<1x5x5xf32>
    %115 = math.exp %114 : vector<1x5x5xf32>
    %cst_48 = arith.constant dense<0.000000e+00> : vector<1x5xf32>
    %116 = vector.multi_reduction <add>, %115, %cst_48 [2] : vector<1x5x5xf32> to vector<1x5xf32>
    %117 = vector.shape_cast %116 : vector<1x5xf32> to vector<1x5x1xf32>
    %118 = vector.broadcast %117 : vector<1x5x1xf32> to vector<1x5x5xf32>
    %119 = arith.divf %115, %118 : vector<1x5x5xf32>
    %120 = arith.truncf %119 : vector<1x5x5xf32> to vector<1x5x5xbf16>
    %121 = vector.extract_strided_slice %59 {offsets = [0, 0, 24], sizes = [1, 5, 8], strides = [1, 1, 1]} : vector<1x5x32xbf16> to vector<1x5x8xbf16>
    "tpu.trace_start"() <{level = 10 : i32, message = "bqk,bkd->bqd"}> : () -> ()
    %cst_49 = arith.constant dense<0.000000e+00> : vector<1x5x8xf32>
    %122 = tpu.matmul %120, %121, %cst_49 {dimension_numbers = #tpu.dot_dimension_numbers<[2], [1], [1], [2], [0, 0, 0, 1, 1, 2], [0], [0]>} : vector<1x5x5xbf16>, vector<1x5x8xbf16>, vector<1x5x8xf32> -> vector<1x5x8xf32>
    "tpu.trace_stop"() : () -> ()
    %123 = arith.truncf %122 : vector<1x5x8xf32> to vector<1x5x8xbf16>
    %124 = tpu.concatenate %75, %91, %107, %123 in 2 : vector<1x5x8xbf16>, vector<1x5x8xbf16>, vector<1x5x8xbf16>, vector<1x5x8xbf16> -> vector<1x5x32xbf16>
    %125 = vector.shape_cast %124 : vector<1x5x32xbf16> to vector<5x32xbf16>
    %c0_50 = arith.constant 0 : index
    %c0_51 = arith.constant 0 : index
    %c0_52 = arith.constant 0 : index
    %126 = vector.load %arg16[%c0_50, %c0_51, %c0_52] : memref<1x32x32xbf16, #tpu.memory_space<vmem>>, vector<1x32x32xbf16>
    %127 = vector.shape_cast %126 : vector<1x32x32xbf16> to vector<32x32xbf16>
    %cst_53 = arith.constant dense<0.000000e+00> : vector<5x32xf32>
    %128 = tpu.matmul %125, %127, %cst_53 {dimension_numbers = #tpu.dot_dimension_numbers<[1], [0], [0], [1], [0, 0, 1, 1], [], []>} : vector<5x32xbf16>, vector<32x32xbf16>, vector<5x32xf32> -> vector<5x32xf32>
    %c0_54 = arith.constant 0 : index
    %c0_55 = arith.constant 0 : index
    %c0_56 = arith.constant 0 : index
    %129 = vector.load %arg17[%c0_54, %c0_55, %c0_56] : memref<1x1x32xf32, #tpu.memory_space<vmem>>, vector<1x1x32xf32>
    %130 = vector.shape_cast %129 : vector<1x1x32xf32> to vector<1x32xf32>
    %131 = vector.broadcast %130 : vector<1x32xf32> to vector<5x32xf32>
    %132 = arith.addf %128, %131 : vector<5x32xf32>
    %133 = arith.addf %3, %132 : vector<5x32xf32>
    %c0_57 = arith.constant 0 : index
    %c0_58 = arith.constant 0 : index
    %c0_59 = arith.constant 0 : index
    %134 = vector.load %arg18[%c0_57, %c0_58, %c0_59] : memref<1x1x32xf32, #tpu.memory_space<vmem>>, vector<1x1x32xf32>
    %135 = vector.shape_cast %134 : vector<1x1x32xf32> to vector<1x32xf32>
    %c0_60 = arith.constant 0 : index
    %c0_61 = arith.constant 0 : index
    %c0_62 = arith.constant 0 : index
    %136 = vector.load %arg19[%c0_60, %c0_61, %c0_62] : memref<1x1x32xf32, #tpu.memory_space<vmem>>, vector<1x1x32xf32>
    %137 = vector.shape_cast %136 : vector<1x1x32xf32> to vector<1x32xf32>
    %cst_63 = arith.constant dense<0.000000e+00> : vector<5xf32>
    %138 = vector.multi_reduction <add>, %133, %cst_63 [1] : vector<5x32xf32> to vector<5xf32>
    %139 = vector.shape_cast %138 : vector<5xf32> to vector<5x1xf32>
    %cst_64 = arith.constant 3.200000e+01 : f32
    %140 = vector.broadcast %cst_64 : f32 to vector<5x1xf32>
    %141 = arith.divf %139, %140 : vector<5x1xf32>
    %142 = vector.broadcast %141 : vector<5x1xf32> to vector<5x32xf32>
    %143 = arith.subf %133, %142 : vector<5x32xf32>
    %144 = arith.mulf %143, %143 : vector<5x32xf32>
    %cst_65 = arith.constant dense<0.000000e+00> : vector<5xf32>
    %145 = vector.multi_reduction <add>, %144, %cst_65 [1] : vector<5x32xf32> to vector<5xf32>
    %146 = vector.shape_cast %145 : vector<5xf32> to vector<5x1xf32>
    %cst_66 = arith.constant 3.200000e+01 : f32
    %147 = vector.broadcast %cst_66 : f32 to vector<5x1xf32>
    %148 = arith.divf %146, %147 : vector<5x1xf32>
    %149 = vector.broadcast %141 : vector<5x1xf32> to vector<5x32xf32>
    %150 = arith.subf %133, %149 : vector<5x32xf32>
    %cst_67 = arith.constant 9.99999974E-6 : f32
    %151 = vector.broadcast %cst_67 : f32 to vector<5x1xf32>
    %152 = arith.addf %148, %151 : vector<5x1xf32>
    %153 = math.rsqrt %152 : vector<5x1xf32>
    %154 = vector.broadcast %153 : vector<5x1xf32> to vector<5x32xf32>
    %155 = arith.mulf %150, %154 : vector<5x32xf32>
    %156 = vector.broadcast %135 : vector<1x32xf32> to vector<5x32xf32>
    %157 = arith.mulf %155, %156 : vector<5x32xf32>
    %158 = vector.broadcast %137 : vector<1x32xf32> to vector<5x32xf32>
    %159 = arith.addf %157, %158 : vector<5x32xf32>
    %160 = arith.truncf %159 : vector<5x32xf32> to vector<5x32xbf16>
    %c0_68 = arith.constant 0 : index
    %c0_69 = arith.constant 0 : index
    %c0_70 = arith.constant 0 : index
    %161 = vector.load %arg20[%c0_68, %c0_69, %c0_70] : memref<1x32x64xbf16, #tpu.memory_space<vmem>>, vector<1x32x64xbf16>
    %162 = vector.shape_cast %161 : vector<1x32x64xbf16> to vector<32x64xbf16>
    %cst_71 = arith.constant dense<0.000000e+00> : vector<5x64xf32>
    %163 = tpu.matmul %160, %162, %cst_71 {dimension_numbers = #tpu.dot_dimension_numbers<[1], [0], [0], [1], [0, 0, 1, 1], [], []>} : vector<5x32xbf16>, vector<32x64xbf16>, vector<5x64xf32> -> vector<5x64xf32>
    %c0_72 = arith.constant 0 : index
    %c0_73 = arith.constant 0 : index
    %c0_74 = arith.constant 0 : index
    %164 = vector.load %arg21[%c0_72, %c0_73, %c0_74] : memref<1x1x64xf32, #tpu.memory_space<vmem>>, vector<1x1x64xf32>
    %165 = vector.shape_cast %164 : vector<1x1x64xf32> to vector<1x64xf32>
    %166 = vector.broadcast %165 : vector<1x64xf32> to vector<5x64xf32>
    %167 = arith.addf %163, %166 : vector<5x64xf32>
    %cst_75 = arith.constant 1.702000e+00 : f32
    %168 = vector.broadcast %cst_75 : f32 to vector<5x64xf32>
    %169 = arith.mulf %168, %167 : vector<5x64xf32>
    %170 = arith.negf %169 : vector<5x64xf32>
    %171 = math.exp %170 : vector<5x64xf32>
    %cst_76 = arith.constant 1.000000e+00 : f32
    %172 = vector.broadcast %cst_76 : f32 to vector<5x64xf32>
    %173 = arith.addf %172, %171 : vector<5x64xf32>
    %174 = arith.divf %172, %173 : vector<5x64xf32>
    %175 = arith.mulf %167, %174 : vector<5x64xf32>
    %176 = arith.truncf %175 : vector<5x64xf32> to vector<5x64xbf16>
    %c0_77 = arith.constant 0 : index
    %c0_78 = arith.constant 0 : index
    %c0_79 = arith.constant 0 : index
    %177 = vector.load %arg22[%c0_77, %c0_78, %c0_79] : memref<1x64x32xbf16, #tpu.memory_space<vmem>>, vector<1x64x32xbf16>
    %178 = vector.shape_cast %177 : vector<1x64x32xbf16> to vector<64x32xbf16>
    %cst_80 = arith.constant dense<0.000000e+00> : vector<5x32xf32>
    %179 = tpu.matmul %176, %178, %cst_80 {dimension_numbers = #tpu.dot_dimension_numbers<[1], [0], [0], [1], [0, 0, 1, 1], [], []>} : vector<5x64xbf16>, vector<64x32xbf16>, vector<5x32xf32> -> vector<5x32xf32>
    %c0_81 = arith.constant 0 : index
    %c0_82 = arith.constant 0 : index
    %c0_83 = arith.constant 0 : index
    %180 = vector.load %arg23[%c0_81, %c0_82, %c0_83] : memref<1x1x32xf32, #tpu.memory_space<vmem>>, vector<1x1x32xf32>
    %181 = vector.shape_cast %180 : vector<1x1x32xf32> to vector<1x32xf32>
    %182 = vector.broadcast %181 : vector<1x32xf32> to vector<5x32xf32>
    %183 = arith.addf %179, %182 : vector<5x32xf32>
    %184 = arith.addf %133, %183 : vector<5x32xf32>
    %c0_84 = arith.constant 0 : index
    %c0_85 = arith.constant 0 : index
    %185 = vector.load %arg28[%c0_84, %c0_85] : memref<5x32xf32, #tpu.memory_space<vmem>>, vector<5x32xf32>
    tpu.vector_store %arg28[%c0_84, %c0_85], %184 {strides = array<i32>} : memref<5x32xf32, #tpu.memory_space<vmem>>, vector<5x32xf32>,
    %c1_i32 = arith.constant 1 : i32
    %186 = arith.cmpi eq, %arg1, %c1_i32 : i32
    %187 = arith.extui %186 : i1 to i32
    %c0_i32_86 = arith.constant 0 : i32
    %188 = arith.cmpi ne, %187, %c0_i32_86 : i32
    scf.if %188 {
      %c0_87 = arith.constant 0 : index
      %c0_88 = arith.constant 0 : index
      %189 = vector.load %arg28[%c0_87, %c0_88] : memref<5x32xf32, #tpu.memory_space<vmem>>, vector<5x32xf32>
      %190 = vector.shape_cast %189 : vector<5x32xf32> to vector<1x5x32xf32>
      %191 = vector.extract_strided_slice %190 {offsets = [0, 0, 0], sizes = [1, 1, 32], strides = [1, 1, 1]} : vector<1x5x32xf32> to vector<1x1x32xf32>
      %192 = vector.shape_cast %191 : vector<1x1x32xf32> to vector<1x32xf32>
      %c0_89 = arith.constant 0 : index
      %c0_90 = arith.constant 0 : index
      %193 = vector.load %arg24[%c0_89, %c0_90] : memref<1x32xf32, #tpu.memory_space<vmem>>, vector<1x32xf32>
      %c0_91 = arith.constant 0 : index
      %c0_92 = arith.constant 0 : index
      %194 = vector.load %arg25[%c0_91, %c0_92] : memref<1x32xf32, #tpu.memory_space<vmem>>, vector<1x32xf32>
      %cst_93 = arith.constant dense<0.000000e+00> : vector<1xf32>
      %195 = vector.multi_reduction <add>, %192, %cst_93 [1] : vector<1x32xf32> to vector<1xf32>
      %196 = vector.shape_cast %195 : vector<1xf32> to vector<1x1xf32>
      %cst_94 = arith.constant 3.200000e+01 : f32
      %197 = vector.broadcast %cst_94 : f32 to vector<1x1xf32>
      %198 = arith.divf %196, %197 : vector<1x1xf32>
      %199 = vector.broadcast %198 : vector<1x1xf32> to vector<1x32xf32>
      %200 = arith.subf %192, %199 : vector<1x32xf32>
      %201 = arith.mulf %200, %200 : vector<1x32xf32>
      %cst_95 = arith.constant dense<0.000000e+00> : vector<1xf32>
      %202 = vector.multi_reduction <add>, %201, %cst_95 [1] : vector<1x32xf32> to vector<1xf32>
      %203 = vector.shape_cast %202 : vector<1xf32> to vector<1x1xf32>
      %cst_96 = arith.constant 3.200000e+01 : f32
      %204 = vector.broadcast %cst_96 : f32 to vector<1x1xf32>
      %205 = arith.divf %203, %204 : vector<1x1xf32>
      %206 = vector.broadcast %198 : vector<1x1xf32> to vector<1x32xf32>
      %207 = arith.subf %192, %206 : vector<1x32xf32>
      %cst_97 = arith.constant 9.99999974E-6 : f32
      %208 = vector.broadcast %cst_97 : f32 to vector<1x1xf32>
      %209 = arith.addf %205, %208 : vector<1x1xf32>
      %210 = math.rsqrt %209 : vector<1x1xf32>
      %211 = vector.broadcast %210 : vector<1x1xf32> to vector<1x32xf32>
      %212 = arith.mulf %207, %211 : vector<1x32xf32>
      %213 = arith.mulf %212, %193 : vector<1x32xf32>
      %214 = arith.addf %213, %194 : vector<1x32xf32>
      %215 = arith.truncf %214 : vector<1x32xf32> to vector<1x32xbf16>
      %c0_98 = arith.constant 0 : index
      %c0_99 = arith.constant 0 : index
      %216 = vector.load %arg26[%c0_98, %c0_99] : memref<32x16xbf16, #tpu.memory_space<vmem>>, vector<32x16xbf16>
      %cst_100 = arith.constant dense<0.000000e+00> : vector<1x16xf32>
      %217 = tpu.matmul %215, %216, %cst_100 {dimension_numbers = #tpu.dot_dimension_numbers<[1], [0], [0], [1], [0, 0, 1, 1], [], []>} : vector<1x32xbf16>, vector<32x16xbf16>, vector<1x16xf32> -> vector<1x16xf32>
      %c0_101 = arith.constant 0 : index
      %c0_102 = arith.constant 0 : index
      %c0_103 = arith.constant 0 : index
      %218 = vector.load %arg27[%c0_101, %c0_102, %c0_103] : memref<1x1x16xf32, #tpu.memory_space<vmem>>, vector<1x1x16xf32>
      %219 = vector.shape_cast %218 : vector<1x1x16xf32> to vector<1x16xf32>
      %220 = vector.shape_cast %217 : vector<1x16xf32> to vector<1x1x16xf32>
      tpu.vector_store %arg27[%c0_101, %c0_102, %c0_103], %220 {strides = array<i32>} : memref<1x1x16xf32, #tpu.memory_space<vmem>>, vector<1x1x16xf32>,
    } else {
    }
    return
  }
  func.func @transform_0(%arg0: i32, %arg1: i32) -> (i32, i32, i32) {
    %c0_i32 = arith.constant 0 : i32
    %c0_i32_0 = arith.constant 0 : i32
    %c0_i32_1 = arith.constant 0 : i32
    return %arg0, %c0_i32, %c0_i32_0 : i32, i32, i32
  }
  func.func @transform_1(%arg0: i32, %arg1: i32) -> (i32, i32) {
    %c0_i32 = arith.constant 0 : i32
    %c0_i32_0 = arith.constant 0 : i32
    %c0_i32_1 = arith.constant 0 : i32
    return %c0_i32, %c0_i32_0 : i32, i32
  }
  func.func @transform_2(%arg0: i32, %arg1: i32) -> (i32, i32) {
    %c0_i32 = arith.constant 0 : i32
    %c0_i32_0 = arith.constant 0 : i32
    %c0_i32_1 = arith.constant 0 : i32
    return %c0_i32, %c0_i32_0 : i32, i32
  }
  func.func @transform_3(%arg0: i32, %arg1: i32) -> (i32, i32) {
    %c0_i32 = arith.constant 0 : i32
    %c0_i32_0 = arith.constant 0 : i32
    %c0_i32_1 = arith.constant 0 : i32
    return %c0_i32, %c0_i32_0 : i32, i32
  }
  func.func @transform_4(%arg0: i32, %arg1: i32) -> (i32, i32) {
    %c0_i32 = arith.constant 0 : i32
    %c0_i32_0 = arith.constant 0 : i32
    %c0_i32_1 = arith.constant 0 : i32
    return %c0_i32, %c0_i32_0 : i32, i32
  }
  func.func @transform_5(%arg0: i32, %arg1: i32) -> (i32, i32) {
    %c0_i32 = arith.constant 0 : i32
    %c0_i32_0 = arith.constant 0 : i32
    %c0_i32_1 = arith.constant 0 : i32
    return %c0_i32, %c0_i32_0 : i32, i32
  }
  func.func @transform_6(%arg0: i32, %arg1: i32) -> (i32, i32, i32) {
    %c0_i32 = arith.constant 0 : i32
    %c0_i32_0 = arith.constant 0 : i32
    %c0_i32_1 = arith.constant 0 : i32
    return %arg1, %c0_i32, %c0_i32_0 : i32, i32, i32
  }
  func.func @transform_7(%arg0: i32, %arg1: i32) -> (i32, i32, i32) {
    %c0_i32 = arith.constant 0 : i32
    %c0_i32_0 = arith.constant 0 : i32
    %c0_i32_1 = arith.constant 0 : i32
    return %arg1, %c0_i32, %c0_i32_0 : i32, i32, i32
  }
  func.func @transform_8(%arg0: i32, %arg1: i32) -> (i32, i32, i32) {
    %c0_i32 = arith.constant 0 : i32
    %c0_i32_0 = arith.constant 0 : i32
    %c0_i32_1 = arith.constant 0 : i32
    return %arg1, %c0_i32, %c0_i32_0 : i32, i32, i32
  }
  func.func @transform_9(%arg0: i32, %arg1: i32) -> (i32, i32, i32) {
    %c0_i32 = arith.constant 0 : i32
    %c0_i32_0 = arith.constant 0 : i32
    %c0_i32_1 = arith.constant 0 : i32
    return %arg1, %c0_i32, %c0_i32_0 : i32, i32, i32
  }
  func.func @transform_10(%arg0: i32, %arg1: i32) -> (i32, i32, i32) {
    %c0_i32 = arith.constant 0 : i32
    %c0_i32_0 = arith.constant 0 : i32
    %c0_i32_1 = arith.constant 0 : i32
    return %arg1, %c0_i32, %c0_i32_0 : i32, i32, i32
  }
  func.func @transform_11(%arg0: i32, %arg1: i32) -> (i32, i32, i32) {
    %c0_i32 = arith.constant 0 : i32
    %c0_i32_0 = arith.constant 0 : i32
    %c0_i32_1 = arith.constant 0 : i32
    return %arg1, %c0_i32, %c0_i32_0 : i32, i32, i32
  }
  func.func @transform_12(%arg0: i32, %arg1: i32) -> (i32, i32, i32) {
    %c0_i32 = arith.constant 0 : i32
    %c0_i32_0 = arith.constant 0 : i32
    %c0_i32_1 = arith.constant 0 : i32
    return %arg1, %c0_i32, %c0_i32_0 : i32, i32, i32
  }
  func.func @transform_13(%arg0: i32, %arg1: i32) -> (i32, i32, i32) {
    %c0_i32 = arith.constant 0 : i32
    %c0_i32_0 = arith.constant 0 : i32
    %c0_i32_1 = arith.constant 0 : i32
    return %arg1, %c0_i32, %c0_i32_0 : i32, i32, i32
  }
  func.func @transform_14(%arg0: i32, %arg1: i32) -> (i32, i32, i32) {
    %c0_i32 = arith.constant 0 : i32
    %c0_i32_0 = arith.constant 0 : i32
    %c0_i32_1 = arith.constant 0 : i32
    return %arg1, %c0_i32, %c0_i32_0 : i32, i32, i32
  }
  func.func @transform_15(%arg0: i32, %arg1: i32) -> (i32, i32, i32) {
    %c0_i32 = arith.constant 0 : i32
    %c0_i32_0 = arith.constant 0 : i32
    %c0_i32_1 = arith.constant 0 : i32
    return %arg1, %c0_i32, %c0_i32_0 : i32, i32, i32
  }
  func.func @transform_16(%arg0: i32, %arg1: i32) -> (i32, i32, i32) {
    %c0_i32 = arith.constant 0 : i32
    %c0_i32_0 = arith.constant 0 : i32
    %c0_i32_1 = arith.constant 0 : i32
    return %arg1, %c0_i32, %c0_i32_0 : i32, i32, i32
  }
  func.func @transform_17(%arg0: i32, %arg1: i32) -> (i32, i32, i32) {
    %c0_i32 = arith.constant 0 : i32
    %c0_i32_0 = arith.constant 0 : i32
    %c0_i32_1 = arith.constant 0 : i32
    return %arg1, %c0_i32, %c0_i32_0 : i32, i32, i32
  }
  func.func @transform_18(%arg0: i32, %arg1: i32) -> (i32, i32, i32) {
    %c0_i32 = arith.constant 0 : i32
    %c0_i32_0 = arith.constant 0 : i32
    %c0_i32_1 = arith.constant 0 : i32
    return %arg1, %c0_i32, %c0_i32_0 : i32, i32, i32
  }
  func.func @transform_19(%arg0: i32, %arg1: i32) -> (i32, i32, i32) {
    %c0_i32 = arith.constant 0 : i32
    %c0_i32_0 = arith.constant 0 : i32
    %c0_i32_1 = arith.constant 0 : i32
    return %arg1, %c0_i32, %c0_i32_0 : i32, i32, i32
  }
  func.func @transform_20(%arg0: i32, %arg1: i32) -> (i32, i32, i32) {
    %c0_i32 = arith.constant 0 : i32
    %c0_i32_0 = arith.constant 0 : i32
    %c0_i32_1 = arith.constant 0 : i32
    return %arg1, %c0_i32, %c0_i32_0 : i32, i32, i32
  }
  func.func @transform_21(%arg0: i32, %arg1: i32) -> (i32, i32, i32) {
    %c0_i32 = arith.constant 0 : i32
    %c0_i32_0 = arith.constant 0 : i32
    %c0_i32_1 = arith.constant 0 : i32
    return %arg1, %c0_i32, %c0_i32_0 : i32, i32, i32
  }
  func.func @transform_22(%arg0: i32, %arg1: i32) -> (i32, i32) {
    %c0_i32 = arith.constant 0 : i32
    %c0_i32_0 = arith.constant 0 : i32
    %c0_i32_1 = arith.constant 0 : i32
    return %c0_i32, %c0_i32_0 : i32, i32
  }
  func.func @transform_23(%arg0: i32, %arg1: i32) -> (i32, i32) {
    %c0_i32 = arith.constant 0 : i32
    %c0_i32_0 = arith.constant 0 : i32
    %c0_i32_1 = arith.constant 0 : i32
    return %c0_i32, %c0_i32_0 : i32, i32
  }
  func.func @transform_24(%arg0: i32, %arg1: i32) -> (i32, i32) {
    %c0_i32 = arith.constant 0 : i32
    %c0_i32_0 = arith.constant 0 : i32
    %c0_i32_1 = arith.constant 0 : i32
    return %c0_i32, %c0_i32_0 : i32, i32
  }
  func.func @transform_25(%arg0: i32, %arg1: i32) -> (i32, i32, i32) {
    %c0_i32 = arith.constant 0 : i32
    %c0_i32_0 = arith.constant 0 : i32
    %c0_i32_1 = arith.constant 0 : i32
    return %arg0, %c0_i32, %c0_i32_0 : i32, i32, i32
  }
}

</mosaic_0001>

<bundles_post_ra>
// kernel: tpu_custom_call.1
= control target key start
LH: loop header
LB: loop body
LE: loop exit
PB: predicated region body
PF: predicated region fallthrough
CT: control target
= control target key end

     0   :  { %s3563_s0 = inlined_call_operand.vmem [shape: bf16[2,4,192], index: 0, kind: input, shape index: {}]   ;;  %s3564_s1 = inlined_call_operand.vmem [shape: bf16[192,32], index: 1, kind: input, shape index: {}]   ;;  %s3565_s2 = inlined_call_operand.vmem [shape: f32[1,32], index: 2, kind: input, shape index: {}]   ;;  %s3566_s3 = inlined_call_operand.vmem [shape: f32[5,32], index: 3, kind: input, shape index: {}]   ;;  %s3567_s4 = inlined_call_operand.vmem [shape: f32[1,32], index: 4, kind: input, shape index: {}]   ;;  %s3568_s5 = inlined_call_operand.vmem [shape: f32[1,32], index: 5, kind: input, shape index: {}]   ;;  %s3569_s6 = inlined_call_operand.vmem [shape: f32[2,1,32], index: 6, kind: input, shape index: {}]   ;;  %s3570_s7 = inlined_call_operand.vmem [shape: f32[2,1,32], index: 7, kind: input, shape index: {}]   ;;  %s3571_s8 = inlined_call_operand.vmem [shape: bf16[2,32,32], index: 8, kind: input, shape index: {}]   ;;  %s3572_s9 = inlined_call_operand.vmem [shape: f32[2,1,32], index: 9, kind: input, shape index: {}]   ;;  %s3573_s10 = inlined_call_operand.vmem [shape: bf16[2,32,32], index: 10, kind: input, shape index: {}]   ;;  %s3574_s11 = inlined_call_operand.vmem [shape: f32[2,1,32], index: 11, kind: input, shape index: {}]   ;;  %s3575_s12 = inlined_call_operand.vmem [shape: bf16[2,32,32], index: 12, kind: input, shape index: {}]   ;;  %s3576_s13 = inlined_call_operand.vmem [shape: f32[2,1,32], index: 13, kind: input, shape index: {}]   ;;  %s3577_s14 = inlined_call_operand.vmem [shape: bf16[2,32,32], index: 14, kind: input, shape index: {}]   ;;  %s3578_s15 = inlined_call_operand.vmem [shape: f32[2,1,32], index: 15, kind: input, shape index: {}]   ;;  %s3579_s16 = inlined_call_operand.vmem [shape: f32[2,1,32], index: 16, kind: input, shape index: {}]   ;;  %s3580_s17 = inlined_call_operand.vmem [shape: f32[2,1,32], index: 17, kind: input, shape index: {}]   ;;  %s3581_s18 = inlined_call_operand.vmem [shape: bf16[2,32,64], index: 18, kind: input, shape index: {}]   ;;  %s3582_s19 = inlined_call_operand.vmem [shape: f32[2,1,64], index: 19, kind: input, shape index: {}]   ;;  %s3583_s20 = inlined_call_operand.vmem [shape: bf16[2,64,32], index: 20, kind: input, shape index: {}]   ;;  %s3584_s21 = inlined_call_operand.vmem [shape: f32[2,1,32], index: 21, kind: input, shape index: {}]   ;;  %s3585_s22 = inlined_call_operand.vmem [shape: f32[1,32], index: 22, kind: input, shape index: {}]   ;;  %s3586_s23 = inlined_call_operand.vmem [shape: f32[1,32], index: 23, kind: input, shape index: {}]   ;;  %s3587_s24 = inlined_call_operand.vmem [shape: bf16[32,16], index: 24, kind: input, shape index: {}]   ;;  %s3588_s25 = inlined_call_operand.hbm [shape: f32[2,1,16], index: 25, kind: output, shape index: {}]  }
   0x1   :  { %3604 = sst [smem:[#allocation19_spill]] %s3563_s0 }
   0x2   :  { %3605 = sst [smem:[#allocation20_spill]] %s3564_s1 }
   0x3   :  { %3606 = sst [smem:[#allocation21_spill]] %s3565_s2 }
   0x4   :  { %3607 = sst [smem:[#allocation22_spill]] %s3566_s3 }
   0x5   :  { %3608 = sst [smem:[#allocation23_spill]] %s3567_s4 }
   0x6   :  { %3609 = sst [smem:[#allocation24_spill]] %s3568_s5 }
   0x7   :  { %3610 = sst [smem:[#allocation25_spill]] %s3569_s6 }
   0x8   :  { %3611 = sst [smem:[#allocation26_spill]] %s3570_s7 }
   0x9   :  { %3612 = sst [smem:[#allocation27_spill]] %s3571_s8 }
   0xa   :  { %3613 = sst [smem:[#allocation28_spill]] %s3572_s9 }
   0xb   :  { %3614 = sst [smem:[#allocation29_spill]] %s3573_s10 }
   0xc   :  { %3615 = sst [smem:[#allocation30_spill]] %s3575_s12 }
   0xd   :  { %3616 = sst [smem:[#allocation31_spill]] %s3577_s14 }
   0xe   :  { %3617 = sst [smem:[#allocation32_spill]] %s3579_s16 }
   0xf   :  { %3618 = sst [smem:[#allocation33_spill]] %s3583_s20 }
  0x10   :  { %3619 = sst [smem:[#allocation34_spill]] %s3585_s22 }
  0x11   :  { %3620 = sst [smem:[#allocation35_spill]] %s3586_s23 }
  0x12   :  { %3621 = sst [smem:[#allocation36_spill]] %s3587_s24 }
  0x13   :  { %3622 = sst [smem:[#allocation37_spill]] %s3588_s25 }
  0x14   :  { %30 = vsyncpa [#allocation4], 0 }
  0x15   :  { %32 = vsyncpa [#allocation4 + $0x1], 0  ;;  %s3120_s29 = smov 0   ;;  %s3122_s2 = smov 0  }
  0x16   :  { %s3124_s6 = smov 0   ;;  %s3126_s30 = smov 0  }
  0x17   :  { %s3128_s7 = smov 0   ;;  %s3130_s3 = smov 0  }
  0x18   :  { %s3132_s26 = smov 0   ;;  %s3134_s1 = smov 0  }
  0x19 LB: > { %3623 = sst [smem:[#allocation6_spill]] %s2947_s29  ;;  %s2508_s8 = sadd.s32 4294967295, %s2975_s1   ;;  %s2975_s1 = sphi %s3134_s1, %s38_s1   ;;  %s2971_s26 = sphi %s3132_s26, %s3683_s26   ;;  %s2967_s3 = sphi %s3130_s3, %s3682_s3   ;;  %s2963_s7 = sphi %s3128_s7, %s3686_s7   ;;  %s2959_s30 = sphi %s3126_s30, %s3680_s30   ;;  %s2955_s6 = sphi %s3124_s6, %s3679_s6   ;;  %s2951_s2 = sphi %s3122_s2, %s3685_s2   ;;  %s2947_s29 = sphi %s3120_s29, %s3684_s29  }
  0x1a   : > { %3624 = sst [smem:[#allocation7_spill]] %s2955_s6  ;;  %s2509_s27 = sadd.s32 4294967294, %s2975_s1  }
  0x1b   : > { %3625 = sst [smem:[#allocation8_spill]] %s2959_s30  ;;  %s47_s4 = sadd.s32 1, %s2967_s3 }
  0x1c   : > { %3626 = sst [smem:[#allocation9_spill]] %s2963_s7  ;;  %p48_p0 = scmp.ge.s32.totalorder %s47_s4, 2 }
  0x1d   : > { %3627 = sst [smem:[#allocation10_spill]] %s2967_s3  ;;  %s50_s28 = sadd.s32 1, %s2971_s26 }
  0x1e   : > { %3628 = sst [smem:[#allocation11_spill]] %s2971_s26  ;;  %p677_p1 = scmp.ne.s32.totalorder %s2955_s6, %s2951_s2 }
  0x1f   : > { %3629 = sst [smem:[#allocation12_spill]] %s2975_s1  ;;  %p678_p2 = scmp.eq.s32.totalorder %s2508_s8, 3 }
  0x20   : > { %s3688_s4 = smov (%p48_p0, %s47_s4), 0  ;;  %s3690_s28 = smov (!%p48_p0, %s50_s28), %s2971_s26 }
  0x21   : > { %3630 = sst [smem:[#allocation13_spill]] %s3688_s4  ;;  %p3169_p3 = por %p678_p2, %p677_p1 }
  0x22   : > { %p683_p4 = scmp.ne.s32.totalorder %s2951_s2, %s2947_s29  ;;  %p52_p5 = scmp.ge.s32.totalorder %s3690_s28, 2 }
  0x23   : > { %s3631_s9 = scalar_select %p3169_p3, 1, 0 }
  0x24   : > { %p684_p6 = scmp.eq.s32.totalorder %s2509_s27, 3  ;;  %p2512_p7 = scmp.ge.s32.totalorder %s2975_s1, 1 }
  0x25   : > { %3632 = sst [smem:[#allocation14_spill]] %s3631_s9  ;;  %p842_p8 = scmp.lt.s32.totalorder %s2975_s1, 5 }
  0x26   : > { %s3692_s28 = smov (%p52_p5, %s3690_s28), 0  ;;  %p3179_p9 = por %p684_p6, %p683_p4 }
  0x27   : > { %3633 = sst [smem:[#allocation15_spill]] %s3692_s28  ;;  %p843_p10 = pnand %p2512_p7, %p842_p8 }
  0x28   : > { %s3634_s5 = scalar_select %p3179_p9, 1, 0 }
  0x29   : > { %s664_s0 = ssub.s32 %s2971_s26, %s3692_s28  ;;  %s667_s8 = sadd.s32 1, %s2955_s6 }
  0x2a   : > { %3635 = sst [smem:[#allocation16_spill]] %s3634_s5  ;;  %p665_p11 = scmp.eq.s32.totalorder %s664_s0, 0 }
  0x2b   : > { %846 = sbr.rel (%p843_p10) target bundleno = 3617 (0xe21), region = 120 }
  0x2c   : > { %s3187_s4 = scalar_select %p665_p11, %s2955_s6, %s667_s8  }
  0x2e   : > { %3636 = sst [smem:[#allocation17_spill]] %s3187_s4 }
  0x30   : > { %p969_p12 = scmp.lt.s32.totalorder %s2963_s7, 1  ;;  %p974_p13 = scmp.lt.s32.totalorder %s2959_s30, 1 }
  0x31   : > { %s3637_s26 = sld [smem:[#allocation19_spill]]  ;;  %s3648_s23 = sand.u32 1, %s2951_s2  }
  0x32   : > { %s970_s3 = scalar_select %p969_p12, %s2963_s7, 1 }
  0x33   : > { %s3194_s29 = scalar_select %p974_p13, %s2959_s30, 1 }
  0x34   : > { %s2590_s0 = sshll.u32 %s970_s3, 2  ;;  %s3641_s3 = sld [smem:[#allocation27_spill]] }
  0x35   : > { %s2591_s22 = sshll.u32 %s3194_s29, 4  ;;  %s3643_s10 = sld [smem:[#allocation29_spill]] }
  0x36   : > { %s3644_s12 = sld [smem:[#allocation30_spill]]  ;;  %s1025_s1 = scalar_lea.vmem %s3582_s19, %s3194_s29 }
  0x37   : > { %s3199_s27 = scalar_lea.vmem %s3637_s26, %s2590_s0  ;;  %s3645_s14 = sld [smem:[#allocation31_spill]] }
  0x38   : > { %3638 = sst [smem:[#allocation18_spill]] %s3199_s27  ;;  %s1033_s8 = scalar_lea.vmem %s3584_s21, %s3194_s29 }
  0x39   : > { %s3647_s7 = sld [smem:[#allocation33_spill]]  ;;  %s3275_s9 = scalar_lea.vmem [#allocation3], %s3648_s23 }
  0x3a   : > { %s3213_s20 = scalar_lea.vmem %s3641_s3, %s2591_s22  ;;  %s3257_s3 = scalar_lea.vmem %s3581_s18, %s2591_s22 }
  0x3b   : > { %s3222_s4 = scalar_lea.vmem %s3643_s10, %s2591_s22  ;;  %s1017_s10 = scalar_lea.vmem %s3580_s17, %s3194_s29 }
  0x3c   : > { %s3231_s24 = scalar_lea.vmem %s3644_s12, %s2591_s22  ;;  %s3649_s12 = sld [smem:[#allocation8_spill]] }
  0x3d   : > { %s3240_s0 = scalar_lea.vmem %s3645_s14, %s2591_s22  ;;  %s2596_s14 = sshll.u32 %s3194_s29, 5 }
  0x3f   : > { %s3271_s16 = scalar_lea.vmem %s3647_s7, %s2596_s14 }
  0x42   : > { %p2527_p0 = scmp.ne.s32.totalorder %s3649_s12, 0 }
  0x43   : > { %s3650_s28 = sld [smem:[#allocation20_spill]] (!%p2527_p0) }
  0x44   : > { %1038 = sbr.rel (%p2527_p0) target bundleno = 629 (0x275), region = 124  ;;  %s3651_s26 = sld [smem:[#allocation18_spill]] (!%p2527_p0) }
  0x45   : > { %s3652_s14 = sld [smem:[#allocation21_spill]] (!%p2527_p0) }
  0x46   : > { %s3653_s25 = sld [smem:[#allocation22_spill]] (!%p2527_p0) }
  0x47   : > { %s3654_s22 = sld [smem:[#allocation23_spill]] (!%p2527_p0) }
  0x48   : > { %s3655_s6 = sld [smem:[#allocation24_spill]] (!%p2527_p0) }
  0x49   : > { %v2827_v0 = vld [vmem:[%s3650_s28 + $0x38] sm:$0xff]   ;;  %v2977_v1 = vmov 0   ;;  %v2828_v2 = vld [vmem:[%s3650_s28 + $0x30] sm:$0xff]   ;;  %v2829_v3 = vld [vmem:[%s3650_s28 + $0x28] sm:$0xff]   ;;  %vm1146_vm0 = vcmask 523264   ;;  %vm1194_vm1 = vcmask 1040384  }
  0x4a   : > { %1150 = vmatprep.subr.bf16.mxu0 %v2977_v1  ;;  %v2830_v4 = vld [vmem:[%s3650_s28 + $0x20] sm:$0xff]   ;;  %v2831_v7 = vld [vmem:[%s3650_s28 + $0x18] sm:$0xff]   ;;  %v2832_v8 = vld [vmem:[%s3650_s28 + $0x10] sm:$0xff]   ;;  %vm1200_vm2 = vcmask 258048  }
  0x4b   : > { %1151 = vmatpush1.bf16.msra.mxu0 %v2827_v0  ;;  %v2528_v5 = vld.sshfl [vmem:[%s3651_s26] sm:$0x33 pattern:$0x76325410]  ;;  %v2833_v9 = vld [vmem:[%s3650_s28 + $0x8] sm:$0xff]   ;;  %v2835_v11 = vld [vmem:[%s3650_s28 + $0x58] sm:$0xff]  }
  0x4c   : > { %1152 = vmatprep.subr.bf16.mxu0 %v2977_v1  ;;  %v1072_v6 = vcombine.high %v2528_v5, %v2528_v5  ;;  %v2834_v10 = vld [vmem:[%s3650_s28] sm:$0xff]   ;;  %v2836_v12 = vld [vmem:[%s3650_s28 + $0x50] sm:$0xff]   ;;  %v2837_v13 = vld [vmem:[%s3650_s28 + $0x48] sm:$0xff]  }
  0x4d   : > { %v2838_v14 = vld [vmem:[%s3650_s28 + $0x40] sm:$0xff]  }
  0x4e   : > { %2541 = vmatprep.mubr.msk.bf16.mxu0 %vm1146_vm0, %v1072_v6  ;;  %v1190_v16 = vld [vmem:[%s3652_s14] sm:$0x1] }
  0x4f   : > { %1153 = vmatpush1.bf16.msra.mxu0 %v2828_v2  ;;  %v1196_v18 = vld [vmem:[%s3653_s25] sm:$0x1f] }
  0x50   : > { %1154 = vmatprep.subr.bf16.mxu0 %v2977_v1  ;;  %v2542_v34 = vld [vmem:[%s3654_s22] ss:$0 sm:$0xff] }
  0x51   : > { %v2543_v36 = vld [vmem:[%s3655_s6] ss:$0 sm:$0xff] }
  0x53   : > { %1155 = vmatpush1.bf16.msra.mxu0 %v2829_v3 }
  0x54   : > { %1156 = vmatprep.subr.bf16.mxu0 %v2977_v1 }
  0x57   : > { %1157 = vmatpush1.bf16.msra.mxu0 %v2830_v4 }
  0x58   : > { %1158 = vmatprep.subr.bf16.mxu0 %v2977_v1 }
  0x5b   : > { %1159 = vmatpush1.bf16.msra.mxu0 %v2831_v7 }
  0x5c   : > { %1160 = vmatprep.subr.bf16.mxu0 %v2977_v1 }
  0x5f   : > { %1161 = vmatpush1.bf16.msra.mxu0 %v2832_v8 }
  0x60   : > { %1162 = vmatprep.subr.bf16.mxu0 %v2977_v1 }
  0x63   : > { %1163 = vmatpush1.bf16.msra.mxu0 %v2833_v9 }
  0x64   : > { %1164 = vmatprep.subr.bf16.mxu0 %v2977_v1 }
  0x67   : > { %1165 = vmatpush1.bf16.msra.mxu0 %v2834_v10 }
  0x68   : > { %1174 = vmatprep.subr.bf16.mxu0 %v2977_v1 }
  0x6b   : > { %1175 = vmatpush2.bf16.msra.mxu0 %v2835_v11 }
  0x6c   : > { %1176 = vmatprep.subr.bf16.mxu0 %v2977_v1 }
  0x6f   : > { %1177 = vmatpush2.bf16.msra.mxu0 %v2836_v12 }
  0x70   : > { %1178 = vmatprep.subr.bf16.mxu0 %v2977_v1 }
  0x73   : > { %1179 = vmatpush2.bf16.msra.mxu0 %v2837_v13 }
  0x74   : > { %1180 = vmatprep.subr.bf16.mxu0 %v2977_v1 }
  0x77   : > { %1181 = vmatpush2.bf16.msra.mxu0 %v2838_v14 }
  0x7a   : > { %1183 = vmatmul.mubr.bf16.vlgmr.msra.gmra.mxu0 %v2528_v5 }
 0x13a   : > { %v1184_v15 = vpop.f32.mrf.mxu0 }
 0x13b   : > { %v1192_v17 = vrot.slane %v1184_v15, 7 }
 0x13c   : > { %v1186_v19 = vpop.f32.mrf.mxu0 }
 0x13d   : > { %v1195_v20 = vsel %vm1194_vm1, %v1190_v16, %v1192_v17 }
 0x13e   : > { %v1187_v21 = vpop.f32.mrf.mxu0  ;;  %v1197_v22 = vadd.f32 %v1196_v18, %v1195_v20 }
 0x140   : > { %v1188_v23 = vpop.f32.mrf.mxu0  ;;  %v1201_v24 = vsel %vm1200_vm2, %v1197_v22, 0.0 }
 0x141   : > { %1202 = vadd.xlane.f32.xlu0 %v1201_v24 }
 0x1ca   : > { %v1203_v25 = vpop.xlane.xlu0 %1202 }
 0x1cb   : > { %v1205_v26 = vmul.f32 0.03125, %v1203_v25 }
 0x1cd   : > { %v1206_v27 = vsub.f32 %v1197_v22, %v1205_v26 }
 0x1cf   : > { %v1207_v28 = vmul.f32 %v1206_v27, %v1206_v27 }
 0x1d1   : > { %v1208_v29 = vsel %vm1200_vm2, %v1207_v28, 0.0 }
 0x1d2   : > { %1209 = vadd.xlane.f32.xlu0 %v1208_v29 }
 0x25b   : > { %v1210_v30 = vpop.xlane.xlu0 %1209 }
 0x25c   : > { %v1211_v31 = vmul.f32 0.03125, %v1210_v30 }
 0x25e   : > { %v1212_v32 = vadd.f32 1e-05, %v1211_v31 }
 0x260   : > { %2839 = vrsqrt.f32 %v1212_v32 }
 0x26d   : > { %v2840_v33 = vpop.eup %2839 }
 0x26e   : > { %v1214_v35 = vmul.f32 %v2840_v33, %v1206_v27 }
 0x270   : > { %v1221_v37 = vmul.f32 %v2542_v34, %v1214_v35 }
 0x272   : > { %v1228_v38 = vadd.f32 %v2543_v36, %v1221_v37 }
 0x274   : > { %1229 = vst.msk [vmem:[#allocation2] sm:$0x1f] %vm1200_vm2, %v1228_v38 }
 0x275 PF: > { %vm1233_vm3 = vcmask 258048   ;;  %v2841_v46 = vld [vmem:[%s3213_s20 + $0x8] sm:$0xff]   ;;  %v2978_v48 = vmov 0.0   ;;  %v2843_v49 = vld [vmem:[%s3213_s20] sm:$0xff]   ;;  %vm2979_vm4 = vmmov 0   ;;  %s3656_s26 = sld [smem:[#allocation25_spill]]  ;;  %s3662_s20 = scalar_lea.vmem %s3574_s11, %s3194_s29 }
 0x276   : > { %v2842_v47 = vld [vmem:[%s3222_s4 + $0x8] sm:$0xff]   ;;  %2636 = vmatprep.subr.bf16.mxu0 %v2978_v48  ;;  %2644 = vmatprep.subr.bf16.mxu1 %v2978_v48  ;;  %v2844_v50 = vld [vmem:[%s3222_s4] sm:$0xff]   ;;  %s3658_s25 = sld [smem:[#allocation26_spill]]  ;;  %vm1286_vm5 = vcmask 261120   ;;  %vm1460_vm6 = vcmask 64512   ;;  %vm1524_vm7 = vcmask 1041408   ;;  %s3663_s5 = scalar_lea.vmem %s3576_s13, %s3194_s29 }
 0x277   : > { %2637 = vmatpush3.bf16.msra.mxu0 %v2841_v46  ;;  %2645 = vmatpush3.bf16.msra.mxu1 %v2842_v47  ;;  %v2845_v60 = vld [vmem:[%s3231_s24 + $0x8] sm:$0xff]   ;;  %v2846_v62 = vld [vmem:[%s3231_s24] sm:$0xff]   ;;  %s3660_s30 = sld [smem:[#allocation28_spill]]  ;;  %s2980_s4 = smov 112   ;;  %vm1525_vm8 = vcmask 1042432   ;;  %v2982_v16 = vmov 65535  }
 0x278   : > { %2638 = vmatprep.subr.bf16.mxu0 %v2978_v48  ;;  %2646 = vmatprep.subr.bf16.mxu1 %v2978_v48  ;;  %v2550_v0 = vld [vmem:[%s3662_s20] ss:$0 sm:$0xff]  ;;  %v1526_v17 = vsel %vm1524_vm7, 4294967295, %v2982_v16  ;;  %vm1507_vm9 = vcmask 36864   ;;  %vm1520_vm10 = vcmask 39936   ;;  %s2985_s12 = smov 16  }
 0x279   : > { %2640 = vmatprep.mubr.msk.bf16.mxu0 %vm2979_vm4, %v2978_v48  ;;  %2648 = vmatprep.mubr.msk.bf16.mxu1 %vm2979_vm4, %v2978_v48  ;;  %v2554_v14 = vld [vmem:[%s3663_s5] ss:$0 sm:$0xff]  ;;  %v3393_v21 = vsel %vm1525_vm8, %v1526_v17, 0  ;;  %vm1920_vm11 = vcmask 130048   ;;  %vm1923_vm12 = vcmask 195584   ;;  %s3665_s20 = sld [smem:[#allocation32_spill]] }
 0x27a   : > { %vm2136_vm13 = vcmask 523264  }
 0x27b   : > { %v3330_v39 = vld [vmem:[#allocation2] sm:$0x1f]  ;;  %2639 = vmatpush3.bf16.msra.mxu0 %v2843_v49  ;;  %2647 = vmatpush3.bf16.msra.mxu1 %v2844_v50  ;;  %s3657_s14 = scalar_lea.vmem %s3656_s26, %s3194_s29  ;;  %s2981_s26 = smov 120  }
 0x27c   : > { %v1234_v40 = vsel %vm1233_vm3, %v3330_v39, 0.0  ;;  %2652 = vmatprep.subr.bf16.mxu0 %v2978_v48  ;;  %2660 = vmatprep.subr.bf16.mxu1 %v2978_v48  ;;  %v2544_v55 = vld [vmem:[%s3657_s14] ss:$0 sm:$0xff]  ;;  %s3659_s23 = scalar_lea.vmem %s3658_s25, %s3194_s29  ;;  %s2983_s25 = smov 104  }
 0x27d   : > { %1235 = vadd.xlane.f32.xlu0 %v1234_v40  ;;  %v2545_v57 = vld [vmem:[%s3659_s23] ss:$0 sm:$0xff]  ;;  %s3661_s24 = scalar_lea.vmem %s3660_s30, %s3194_s29  ;;  %s2984_s23 = smov 8  }
 0x27e   : > { %v2546_v63 = vld [vmem:[%s3661_s24] ss:$0 sm:$0xff]  ;;  %s3664_s24 = scalar_lea.vmem %s3578_s15, %s3194_s29 }
 0x306   : > { %v1236_v41 = vpop.xlane.xlu0 %1235 }
 0x307   : > { %v1238_v42 = vmul.f32 0.03125, %v1236_v41 }
 0x309   : > { %v1239_v43 = vsub.f32 %v3330_v39, %v1238_v42 }
 0x30b   : > { %v1240_v44 = vmul.f32 %v1239_v43, %v1239_v43 }
 0x30d   : > { %v1241_v45 = vsel %vm1233_vm3, %v1240_v44, 0.0 }
 0x30e   : > { %1242 = vadd.xlane.f32.xlu0 %v1241_v45 }
 0x397   : > { %v1243_v51 = vpop.xlane.xlu0 %1242 }
 0x398   : > { %v1244_v52 = vmul.f32 0.03125, %v1243_v51 }
 0x39a   : > { %v1245_v53 = vadd.f32 1e-05, %v1244_v52 }
 0x39c   : > { %2855 = vrsqrt.f32 %v1245_v53 }
 0x3a9   : > { %v2856_v54 = vpop.eup %2855 }
 0x3aa   : > { %v1247_v56 = vmul.f32 %v2856_v54, %v1239_v43 }
 0x3ac   : > { %v1254_v58 = vmul.f32 %v2544_v55, %v1247_v56 }
 0x3ae   : > { %v1261_v59 = vadd.f32 %v2545_v57, %v1254_v58 }
 0x3b0   : > { %v1262_v61 = vpack.c.bf16 %v1261_v59, %v1261_v59 }
 0x3b2   : > { %2641 = vmatmul.mubr.msk.bf16.vlgmr.msra.gmra.mxu0 %vm1286_vm5, %v1262_v61  ;;  %2649 = vmatmul.mubr.msk.bf16.vlgmr.msra.gmra.mxu1 %vm1286_vm5, %v1262_v61 }
 0x3b3   : > { %2653 = vmatpush3.bf16.msra.mxu0 %v2845_v60  ;;  %2656 = vmatprep.mubr.msk.bf16.mxu0 %vm2979_vm4, %v2978_v48 }
 0x3b4   : > { %2654 = vmatprep.subr.bf16.mxu0 %v2978_v48  ;;  %2662 = vmatprep.mubr.msk.bf16.mxu1 %vm2979_vm4, %v2978_v48 }
 0x3b7   : > { %2655 = vmatpush3.bf16.msra.mxu0 %v2846_v62 }
 0x3b8   : > { %2666 = vmatprep.subr.bf16.mxu0 %v2978_v48 }
 0x3ba   : > { %2657 = vmatmul.mubr.msk.bf16.vlgmr.msra.gmra.mxu0 %vm1286_vm5, %v1262_v61 }
 0x3bb   : > { %2668 = vmatprep.mubr.msk.bf16.mxu0 %vm2979_vm4, %v2978_v48 }
 0x472   : > { %v1324_v1 = vpop.f32.mrf.mxu0  ;;  %v1387_v2 = vpop.f32.mrf.mxu1 }
 0x473   : > { %v1325_v3 = vadd.f32 %v2546_v63, %v1324_v1  ;;  %v1388_v4 = vadd.f32 %v2550_v0, %v1387_v2 }
 0x474   : > { %v2642_v5 = vpop.f32.mrf.mxu0  ;;  %v2650_v6 = vpop.f32.mrf.mxu1 }
 0x475   : > { %v1456_v7 = vmul.f32 0.35355338, %v1325_v3  ;;  %v1458_v8 = vpack.c.bf16 %v1388_v4, %v1388_v4 }
 0x476   : > { %v1327_v9 = vpop.f32.mrf.mxu0  ;;  %v1390_v10 = vpop.f32.mrf.mxu1 }
 0x477   : > { %1688 = vrot.lane.b32.xlu0 %v1458_v8, %s2980_s4  ;;  %1576 = vrot.lane.b32.xlu1 %v1458_v8, %s2981_s26  ;;  %v1465_v11 = vsel %vm1460_vm6, %v1458_v8, 0  ;;  %v1457_v15 = vpack.c.bf16 %v1456_v7, %v1456_v7 }
 0x478   : > { %v2643_v12 = vpop.f32.mrf.mxu0  ;;  %v2651_v13 = vpop.f32.mrf.mxu1  ;;  %2661 = vmatpush3.bf16.xpose.msra.mxu1 %v1465_v11 }
 0x479   : > { %2672 = vmatprep.subr.bf16.mxu1 %v2978_v48 }
 0x47a   : > { %v1450_v18 = vpop.f32.mrf.mxu0 }
 0x47b   : > { %v1451_v19 = vadd.f32 %v2554_v14, %v1450_v18  ;;  %1573 = vrot.lane.b32.xlu1 %v1457_v15, %s2981_s26 }
 0x47c   : > { %v2658_v20 = vpop.f32.mrf.mxu0 }
 0x47d   : > { %v3395_v22 = vpack.c.bf16 %v1451_v19, %v1451_v19 }
 0x47e   : > { %v1453_v23 = vpop.f32.mrf.mxu0 }
 0x47f   : > { %1686 = vrot.lane.b32.xlu1 %v1457_v15, %s2980_s4  ;;  %2663 = vmatmul.mubr.msk.bf16.vlgmr.msra.gmra.mxu1 %vm1460_vm6, %v1457_v15  ;;  %v1529_v24 = vand.u32 %v3393_v21, %v3395_v22 }
 0x480   : > { %v2659_v25 = vpop.f32.mrf.mxu0  ;;  %2674 = vmatprep.mubr.msk.bf16.mxu1 %vm2979_vm4, %v2978_v48 }
 0x481   : > { %2667 = vmatpush3.bf16.msra.mxu0 %v1529_v24 }
 0x482   : > { %2678 = vmatprep.subr.bf16.mxu0 %v2978_v48 }
 0x483   : > { %1799 = vrot.lane.b32.xlu1 %v1458_v8, %s2983_s25 }
 0x487   : > { %1797 = vrot.lane.b32.xlu1 %v1457_v15, %s2983_s25 }
 0x4e9   : > { %v1577_v26 = vpop.permute.xlu1 %1576  ;;  %v1689_v29 = vpop.permute.xlu0 %1688 }
 0x4ea   : > { %v1582_v27 = vsel %vm1460_vm6, %v1577_v26, 0  ;;  %v1694_v31 = vsel %vm1460_vm6, %v1689_v29, 0 }
 0x4eb   : > { %2673 = vmatpush3.bf16.xpose.msra.mxu1 %v1582_v27 }
 0x4ec   : > { %2684 = vmatprep.subr.bf16.mxu1 %v2978_v48 }
 0x4ed   : > { %v1574_v28 = vpop.permute.xlu1 %1573 }
 0x4f1   : > { %v1687_v30 = vpop.permute.xlu1 %1686 }
 0x4f2   : > { %2675 = vmatmul.mubr.msk.bf16.vlgmr.msra.gmra.mxu1 %vm1460_vm6, %v1574_v28 }
 0x4f3   : > { %2685 = vmatpush3.bf16.xpose.msra.mxu1 %v1694_v31  ;;  %2686 = vmatprep.mubr.msk.bf16.mxu1 %vm2979_vm4, %v2978_v48 }
 0x4f4   : > { %2696 = vmatprep.subr.bf16.mxu1 %v2978_v48 }
 0x4f5   : > { %v1800_v32 = vpop.permute.xlu1 %1799 }
 0x4f6   : > { %v1805_v33 = vsel %vm1460_vm6, %v1800_v32, 0 }
 0x4f9   : > { %v1798_v34 = vpop.permute.xlu1 %1797 }
 0x4fa   : > { %2687 = vmatmul.mubr.msk.bf16.vlgmr.msra.gmra.mxu1 %vm1460_vm6, %v1687_v30 }
 0x4fb   : > { %2697 = vmatpush3.bf16.xpose.msra.mxu1 %v1805_v33  ;;  %2698 = vmatprep.mubr.msk.bf16.mxu1 %vm2979_vm4, %v2978_v48 }
 0x4fc   : > { %2708 = vmatprep.subr.bf16.mxu1 %v2978_v48 }
 0x502   : > { %2699 = vmatmul.mubr.msk.bf16.vlgmr.msra.gmra.mxu1 %vm1460_vm6, %v1798_v34 }
 0x503   : > { %2712 = vmatprep.mubr.msk.bf16.mxu1 %vm2979_vm4, %v2978_v48 }
 0x53f   : > { %v1501_v35 = vpop.f32.mrf.mxu1 }
 0x540   : > { %v1508_v36 = vsel %vm1507_vm9, %v1501_v35, -inf }
 0x541   : > { %1509 = vmax.xlane.f32.xlu1 %v1508_v36  ;;  %v2664_v37 = vpop.f32.mrf.mxu1 }
 0x543   : > { %v1504_v38 = vpop.f32.mrf.mxu1 }
 0x545   : > { %v2665_v40 = vpop.f32.mrf.mxu1 }
 0x5b2   : > { %v1618_v41 = vpop.f32.mrf.mxu1 }
 0x5b3   : > { %v1624_v42 = vsel %vm1507_vm9, %v1618_v41, -inf }
 0x5b4   : > { %1625 = vmax.xlane.f32.xlu0 %v1624_v42  ;;  %v2676_v43 = vpop.f32.mrf.mxu1 }
 0x5b5   : > { %v2848_v43 = vld [vmem:[%s3240_s0] sm:$0xff]  }
 0x5b6   : > { %v1621_v44 = vpop.f32.mrf.mxu1 }
 0x5b8   : > { %v2677_v45 = vpop.f32.mrf.mxu1 }
 0x5ba   : > { %v1730_v46 = vpop.f32.mrf.mxu1 }
 0x5bb   : > { %v1736_v47 = vsel %vm1507_vm9, %v1730_v46, -inf }
 0x5bc   : > { %1737 = vmax.xlane.f32.xlu1 %v1736_v47  ;;  %v2688_v49 = vpop.f32.mrf.mxu1 }
 0x5be   : > { %v1733_v50 = vpop.f32.mrf.mxu1 }
 0x5c0   : > { %v2689_v51 = vpop.f32.mrf.mxu1 }
 0x5c2   : > { %v1841_v52 = vpop.f32.mrf.mxu1 }
 0x5c3   : > { %v1847_v53 = vsel %vm1507_vm9, %v1841_v52, -inf }
 0x5c4   : > { %1848 = vmax.xlane.f32.xlu1 %v1847_v53  ;;  %v2700_v54 = vpop.f32.mrf.mxu1 }
 0x5c6   : > { %v1844_v55 = vpop.f32.mrf.mxu1 }
 0x5c8   : > { %v2701_v56 = vpop.f32.mrf.mxu1 }
 0x5ca   : > { %v1510_v57 = vpop.xlane.xlu1 %1509 }
 0x5cb   : > { %v1511_v58 = vsub.f32 %v1501_v35, %v1510_v57 }
 0x5cd   : > { %v1512_v59 = vmul.f32 1.442695, %v1511_v58 }
 0x5cf   : > { %2857 = vpow2.f32 %v1512_v59 }
 0x5dc   : > { %v2858_v60 = vpop.eup %2857 }
 0x5dd   : > { %v1514_v61 = vsel %vm1507_vm9, %v2858_v60, 0.0 }
 0x5de   : > { %1515 = vadd.xlane.f32.xlu0 %v1514_v61 }
 0x63d   : > { %v1626_v62 = vpop.xlane.xlu0 %1625 }
 0x63e   : > { %v1627_v63 = vsub.f32 %v1618_v41, %v1626_v62  ;;  %v2847_v41 = vld [vmem:[%s3240_s0 + $0x8] sm:$0xff]   ;;  %s2986_s0 = smov 24  }
 0x63f   : > { %2709 = vmatpush3.bf16.msra.mxu1 %v2847_v41 }
 0x640   : > { %v1628_v0 = vmul.f32 1.442695, %v1627_v63  ;;  %2710 = vmatprep.subr.bf16.mxu1 %v2978_v48 }
 0x642   : > { %2859 = vpow2.f32 %v1628_v0 }
 0x643   : > { %2711 = vmatpush3.bf16.msra.mxu1 %v2848_v43  ;;  %v2577_v43 = vld [vmem:[%s1033_s8] ss:$0 sm:$0xff] }
 0x644   : > { %2724 = vmatprep.subr.bf16.mxu1 %v2978_v48 }
 0x645   : > { %v1738_v1 = vpop.xlane.xlu1 %1737 }
 0x646   : > { %v1739_v2 = vsub.f32 %v1730_v46, %v1738_v1  ;;  %v2566_v1 = vld [vmem:[%s3664_s24] ss:$0 sm:$0xff] }
 0x648   : > { %v1740_v3 = vmul.f32 1.442695, %v1739_v2 }
 0x64a   : > { %2861 = vpow2.f32 %v1740_v3 }
 0x64d   : > { %v1849_v9 = vpop.xlane.xlu1 %1848 }
 0x64e   : > { %v1850_v10 = vsub.f32 %v1841_v52, %v1849_v9 }
 0x64f   : > { %v2860_v4 = vpop.eup %2859 }
 0x650   : > { %v1630_v5 = vsel %vm1507_vm9, %v2860_v4, 0.0  ;;  %v1851_v11 = vmul.f32 1.442695, %v1850_v10 }
 0x651   : > { %1631 = vadd.xlane.f32.xlu1 %v1630_v5 }
 0x657   : > { %v2862_v6 = vpop.eup %2861 }
 0x658   : > { %v1742_v7 = vsel %vm1507_vm9, %v2862_v6, 0.0 }
 0x659   : > { %1743 = vadd.xlane.f32.xlu0 %v1742_v7 }
 0x662   : > { %1748 = vrot.lane.b32.xlu1 %v3395_v22, %s2980_s4  ;;  %s3666_s4 = scalar_lea.vmem %s3665_s20, %s3194_s29 }
 0x667   : > { %v1516_v8 = vpop.xlane.xlu0 %1515 }
 0x668   : > { %2863 = vrcp.f32 %v1516_v8 }
 0x669   : > { %2865 = vpow2.f32 %v1851_v11 }
 0x66f   : > { %1637 = vrot.lane.b32.xlu0 %v3395_v22, %s2981_s26 }
 0x675   : > { %v2864_v12 = vpop.eup %2863 }
 0x676   : > { %v1518_v13 = vmul.f32 %v2864_v12, %v2858_v60  ;;  %v2866_v15 = vpop.eup %2865 }
 0x677   : > { %v1853_v16 = vsel %vm1507_vm9, %v2866_v15, 0.0 }
 0x678   : > { %v1519_v14 = vpack.c.bf16 %v1518_v13, %v1518_v13 }
 0x67a   : > { %2669 = vmatmul.mubr.msk.bf16.vlgmr.msra.gmra.mxu0 %vm1520_vm10, %v1519_v14  ;;  %v2849_v14 = vld [vmem:[%s3257_s3 + $0x8] sm:$0xff]  }
 0x67b   : > { %2680 = vmatprep.mubr.msk.bf16.mxu0 %vm2979_vm4, %v2978_v48 }
 0x686   : > { %1854 = vadd.xlane.f32.xlu1 %v1853_v16 }
 0x697   : > { %1859 = vrot.lane.b32.xlu1 %v3395_v22, %s2983_s25 }
 0x6da   : > { %v1632_v17 = vpop.xlane.xlu1 %1631 }
 0x6db   : > { %2867 = vrcp.f32 %v1632_v17 }
 0x6de   : > { %v1749_v24 = vpop.permute.xlu1 %1748 }
 0x6df   : > { %v1754_v27 = vand.u32 %v1749_v24, %v3393_v21 }
 0x6e2   : > { %v1744_v18 = vpop.xlane.xlu0 %1743 }
 0x6e3   : > { %2869 = vrcp.f32 %v1744_v18 }
 0x6e6   : > { %v1638_v19 = vpop.permute.xlu0 %1637 }
 0x6e7   : > { %v1643_v20 = vand.u32 %v1638_v19, %v3393_v21  ;;  %v2570_v19 = vld [vmem:[%s3666_s4] ss:$0 sm:$0xff] }
 0x6e8   : > { %v2868_v23 = vpop.eup %2867 }
 0x6e9   : > { %2679 = vmatpush3.bf16.msra.mxu0 %v1643_v20  ;;  %v1634_v25 = vmul.f32 %v2868_v23, %v2860_v4  ;;  %v2571_v23 = vld [vmem:[%s1017_s10] ss:$0 sm:$0xff] }
 0x6ea   : > { %2690 = vmatprep.subr.bf16.mxu0 %v2978_v48 }
 0x6eb   : > { %v1635_v26 = vpack.c.bf16 %v1634_v25, %v1634_v25 }
 0x6ed   : > { %2681 = vmatmul.mubr.msk.bf16.vlgmr.msra.gmra.mxu0 %vm1520_vm10, %v1635_v26 }
 0x6ee   : > { %2691 = vmatpush3.bf16.msra.mxu0 %v1754_v27  ;;  %2692 = vmatprep.mubr.msk.bf16.mxu0 %vm2979_vm4, %v2978_v48  ;;  %v2851_v27 = vld [vmem:[%s3271_s16 + $0x18] sm:$0xff]  }
 0x6ef   : > { %2702 = vmatprep.subr.bf16.mxu0 %v2978_v48 }
 0x6f0   : > { %v2870_v22 = vpop.eup %2869 }
 0x6f1   : > { %v1746_v28 = vmul.f32 %v2870_v22, %v2862_v6  ;;  %v2852_v22 = vld [vmem:[%s3271_s16 + $0x10] sm:$0xff]  }
 0x6f3   : > { %v1747_v29 = vpack.c.bf16 %v1746_v28, %v1746_v28  ;;  %v2853_v28 = vld [vmem:[%s3271_s16 + $0x8] sm:$0xff]  }
 0x6f5   : > { %2693 = vmatmul.mubr.msk.bf16.vlgmr.msra.gmra.mxu0 %vm1520_vm10, %v1747_v29  ;;  %v2854_v29 = vld [vmem:[%s3271_s16] sm:$0xff]  }
 0x6f6   : > { %2704 = vmatprep.mubr.msk.bf16.mxu0 %vm2979_vm4, %v2978_v48 }
 0x70f   : > { %v1855_v30 = vpop.xlane.xlu1 %1854 }
 0x710   : > { %2871 = vrcp.f32 %v1855_v30  ;;  %v2572_v30 = vld [vmem:[%s1025_s1] ss:$0 sm:$0xff]  ;;  %s3667_s1 = sld [smem:[#allocation8_spill]] }
 0x713   : > { %v1860_v31 = vpop.permute.xlu1 %1859 }
 0x714   : > { %v1865_v32 = vand.u32 %v1860_v31, %v3393_v21 }
 0x716   : > { %2703 = vmatpush3.bf16.msra.mxu0 %v1865_v32  ;;  %p2583_p1 = scmp.ne.s32.totalorder %s3667_s1, 1 }
 0x717   : > { %2716 = vmatprep.subr.bf16.mxu0 %v2978_v48  ;;  %s3668_s5 = sld [smem:[#allocation36_spill]] (!%p2583_p1) }
 0x718   : > { %s3669_s22 = sld [smem:[#allocation34_spill]] (!%p2583_p1) }
 0x719   : > { %s3670_s27 = sld [smem:[#allocation35_spill]] (!%p2583_p1) }
 0x71d   : > { %v2872_v33 = vpop.eup %2871 }
 0x71e   : > { %v1857_v34 = vmul.f32 %v2872_v33, %v2866_v15  ;;  %v2850_v15 = vld [vmem:[%s3257_s3] sm:$0xff]  }
 0x720   : > { %v1858_v35 = vpack.c.bf16 %v1857_v34, %v1857_v34 }
 0x722   : > { %2705 = vmatmul.mubr.msk.bf16.vlgmr.msra.gmra.mxu0 %vm1520_vm10, %v1858_v35 }
 0x723   : > { %2720 = vmatprep.mubr.msk.bf16.mxu0 %vm2979_vm4, %v2978_v48  ;;  %2717 = vmatpush3.bf16.msra.mxu0 %v2849_v14 }
 0x724   : > { %2718 = vmatprep.subr.bf16.mxu0 %v2978_v48 }
 0x727   : > { %2719 = vmatpush3.bf16.msra.mxu0 %v2850_v15 }
 0x73a   : > { %v1565_v36 = vpop.f32.mrf.mxu0 }
 0x73b   : > { %v1571_v59 = vpack.c.bf16 %v1565_v36, %v1565_v36 }
 0x73c   : > { %v2670_v37 = vpop.f32.mrf.mxu0 }
 0x73e   : > { %v1568_v38 = vpop.f32.mrf.mxu0 }
 0x740   : > { %v2671_v40 = vpop.f32.mrf.mxu0 }
 0x7ad   : > { %v1679_v42 = vpop.f32.mrf.mxu0 }
 0x7ae   : > { %v1685_v21 = vpack.c.bf16 %v1679_v42, %v1679_v42 }
 0x7af   : > { %v2682_v44 = vpop.f32.mrf.mxu0 }
 0x7b0   : > { %1909 = vrot.lane.b32.xlu0 %v1685_v21, %s2984_s23 }
 0x7b1   : > { %v1682_v45 = vpop.f32.mrf.mxu0 }
 0x7b3   : > { %v2683_v46 = vpop.f32.mrf.mxu0 }
 0x7b5   : > { %v1790_v47 = vpop.f32.mrf.mxu0 }
 0x7b6   : > { %v1796_v49 = vpack.c.bf16 %v1790_v47, %v1790_v47 }
 0x7b7   : > { %v2694_v50 = vpop.f32.mrf.mxu0 }
 0x7b8   : > { %1912 = vrot.lane.b32.xlu1 %v1796_v49, %s2985_s12 }
 0x7b9   : > { %v1793_v51 = vpop.f32.mrf.mxu0 }
 0x7bb   : > { %v2695_v52 = vpop.f32.mrf.mxu0 }
 0x7e2   : > { %v1901_v53 = vpop.f32.mrf.mxu0 }
 0x7e3   : > { %v1907_v54 = vpack.c.bf16 %v1901_v53, %v1901_v53 }
 0x7e4   : > { %v2706_v55 = vpop.f32.mrf.mxu0 }
 0x7e5   : > { %1915 = vrot.lane.b32.xlu0 %v1907_v54, %s2986_s0 }
 0x7e6   : > { %v1904_v56 = vpop.f32.mrf.mxu0 }
 0x7e8   : > { %v2707_v57 = vpop.f32.mrf.mxu0 }
 0x822   : > { %v1910_v58 = vpop.permute.xlu0 %1909 }
 0x823   : > { %v1919_v61 = vsel %vm1460_vm6, %v1571_v59, %v1910_v58 }
 0x82a   : > { %v1913_v60 = vpop.permute.xlu1 %1912 }
 0x82b   : > { %v1922_v62 = vsel %vm1920_vm11, %v1919_v61, %v1913_v60 }
 0x857   : > { %v1916_v63 = vpop.permute.xlu0 %1915 }
 0x858   : > { %v1925_v0 = vsel %vm1923_vm12, %v1922_v62, %v1916_v63 }
 0x859   : > { %2713 = vmatmul.mubr.msk.bf16.vlgmr.msra.gmra.mxu1 %vm1286_vm5, %v1925_v0 }
 0x85a   : > { %2732 = vmatprep.mubr.msk.bf16.mxu1 %vm2979_vm4, %v2978_v48  ;;  %2725 = vmatpush3.bf16.msra.mxu1 %v2851_v27 }
 0x85b   : > { %2726 = vmatprep.subr.bf16.mxu1 %v2978_v48 }
 0x85e   : > { %2727 = vmatpush3.bf16.msra.mxu1 %v2852_v22 }
 0x85f   : > { %2728 = vmatprep.subr.bf16.mxu1 %v2978_v48 }
 0x862   : > { %2729 = vmatpush3.bf16.msra.mxu1 %v2853_v28 }
 0x863   : > { %2730 = vmatprep.subr.bf16.mxu1 %v2978_v48 }
 0x866   : > { %2731 = vmatpush3.bf16.msra.mxu1 %v2854_v29 }
 0x919   : > { %v1985_v2 = vpop.f32.mrf.mxu1 }
 0x91a   : > { %v1986_v3 = vadd.f32 %v2566_v1, %v1985_v2 }
 0x91b   : > { %v2714_v4 = vpop.f32.mrf.mxu1 }
 0x91c   : > { %v1991_v5 = vadd.f32 %v1986_v3, %v3330_v39 }
 0x91d   : > { %v1988_v6 = vpop.f32.mrf.mxu1 }
 0x91e   : > { %v1994_v7 = vsel %vm1233_vm3, %v1991_v5, 0.0 }
 0x91f   : > { %1995 = vadd.xlane.f32.xlu1 %v1994_v7  ;;  %v2715_v8 = vpop.f32.mrf.mxu1 }
 0x9a8   : > { %v1996_v9 = vpop.xlane.xlu1 %1995 }
 0x9a9   : > { %v1997_v10 = vmul.f32 0.03125, %v1996_v9 }
 0x9ab   : > { %v1998_v11 = vsub.f32 %v1991_v5, %v1997_v10 }
 0x9ad   : > { %v1999_v12 = vmul.f32 %v1998_v11, %v1998_v11 }
 0x9af   : > { %v2000_v13 = vsel %vm1233_vm3, %v1999_v12, 0.0 }
 0x9b0   : > { %2001 = vadd.xlane.f32.xlu0 %v2000_v13 }
 0xa39   : > { %v2002_v39 = vpop.xlane.xlu0 %2001 }
 0xa3a   : > { %v2003_v16 = vmul.f32 0.03125, %v2002_v39 }
 0xa3c   : > { %v2004_v17 = vadd.f32 1e-05, %v2003_v16 }
 0xa3e   : > { %2873 = vrsqrt.f32 %v2004_v17 }
 0xa4b   : > { %v2874_v18 = vpop.eup %2873 }
 0xa4c   : > { %v2006_v20 = vmul.f32 %v2874_v18, %v1998_v11 }
 0xa4e   : > { %v2013_v24 = vmul.f32 %v2570_v19, %v2006_v20 }
 0xa50   : > { %v2020_v25 = vadd.f32 %v2571_v23, %v2013_v24 }
 0xa52   : > { %v2021_v26 = vpack.c.bf16 %v2020_v25, %v2020_v25 }
 0xa54   : > { %2721 = vmatmul.mubr.msk.bf16.vlgmr.msra.gmra.mxu0 %vm1286_vm5, %v2021_v26 }
 0xb14   : > { %v2082_v31 = vpop.f32.mrf.mxu0 }
 0xb15   : > { %v2083_v32 = vadd.f32 %v2572_v30, %v2082_v31 }
 0xb16   : > { %v2722_v33 = vpop.f32.mrf.mxu0 }
 0xb17   : > { %v2576_v34 = vmul.f32 -1.702, %v2083_v32 }
 0xb18   : > { %v2085_v35 = vpop.f32.mrf.mxu0 }
 0xb19   : > { %v2090_v36 = vmul.f32 1.442695, %v2576_v34 }
 0xb1a   : > { %v2723_v37 = vpop.f32.mrf.mxu0 }
 0xb1b   : > { %2875 = vpow2.f32 %v2090_v36 }
 0xb28   : > { %v2876_v38 = vpop.eup %2875 }
 0xb29   : > { %v2092_v40 = vadd.f32 1.0, %v2876_v38 }
 0xb2b   : > { %2877 = vrcp.f32 %v2092_v40 }
 0xb38   : > { %v2878_v48 = vpop.eup %2877 }
 0xb39   : > { %v2095_v41 = vmul.f32 %v2878_v48, %v2083_v32 }
 0xb3b   : > { %v2096_v42 = vpack.c.bf16 %v2095_v41, %v2095_v41 }
 0xb3d   : > { %2733 = vmatmul.mubr.msk.bf16.vlgmr.msra.gmra.mxu1 %vm2136_vm13, %v2096_v42 }
 0xbfd   : > { %v2174_v21 = vpop.f32.mrf.mxu1 }
 0xbfe   : > { %v2175_v44 = vadd.f32 %v2577_v43, %v2174_v21 }
 0xbff   : > { %v2734_v45 = vpop.f32.mrf.mxu1  ;;  %2185 = sbr.rel (%p2583_p1) target bundleno = 3591 (0xe07), region = 128 }
 0xc00   : > { %v2180_v46 = vadd.f32 %v2175_v44, %v1991_v5 }
 0xc01   : > { %v2177_v47 = vpop.f32.mrf.mxu1 }
 0xc02   : > { %2181 = vst.msk [vmem:[#allocation2] sm:$0x1f] %vm1233_vm3, %v2180_v46 }
 0xc03   : > { %v2735_v49 = vpop.f32.mrf.mxu1 }
 0xc04   : > { %vm2189_vm14 = vcmask 253952   ;;  %v2879_v57 = vld [vmem:[%s3668_s5 + $0x8] sm:$0xff]   ;;  %v2987_v58 = vmov 0.0   ;;  %vm2988_vm15 = vmmov 0   ;;  %v2880_v59 = vld [vmem:[%s3668_s5] sm:$0xff]   ;;  %vm2265_vm0 = vcmask 122880  }
 0xc05   : > { %2736 = vmatprep.subr.bf16.mxu0 %v2987_v58  ;;  %2740 = vmatprep.mubr.msk.bf16.mxu0 %vm2988_vm15, %v2987_v58  ;;  %v2187_v0 = vld [vmem:[%s3669_s22] sm:$0x1] }
 0xc06   : > { %2737 = vmatpush3.bf16.msra.mxu0 %v2879_v57  ;;  %v2188_v2 = vld [vmem:[%s3670_s27] sm:$0x1] }
 0xc07   : > { %2738 = vmatprep.subr.bf16.mxu0 %v2987_v58 }
 0xc09   : > { %v2186_v50 = vld [vmem:[#allocation2] sm:$0x1f] }
 0xc0a   : > { %v2190_v51 = vsel %vm2189_vm14, %v2186_v50, 0.0  ;;  %2739 = vmatpush3.bf16.msra.mxu0 %v2880_v59 }
 0xc0b   : > { %2191 = vadd.xlane.f32.xlu0 %v2190_v51 }
 0xc94   : > { %v2192_v52 = vpop.xlane.xlu0 %2191 }
 0xc95   : > { %v2193_v53 = vmul.f32 0.03125, %v2192_v52 }
 0xc97   : > { %v2194_v54 = vsub.f32 %v2186_v50, %v2193_v53 }
 0xc99   : > { %v2195_v55 = vmul.f32 %v2194_v54, %v2194_v54 }
 0xc9b   : > { %v2196_v56 = vsel %vm2189_vm14, %v2195_v55, 0.0 }
 0xc9c   : > { %2197 = vadd.xlane.f32.xlu0 %v2196_v56 }
 0xd25   : > { %v2198_v60 = vpop.xlane.xlu0 %2197 }
 0xd26   : > { %v2199_v61 = vmul.f32 0.03125, %v2198_v60 }
 0xd28   : > { %v2200_v62 = vadd.f32 1e-05, %v2199_v61 }
 0xd2a   : > { %2881 = vrsqrt.f32 %v2200_v62 }
 0xd37   : > { %v2882_v63 = vpop.eup %2881 }
 0xd38   : > { %v2202_v1 = vmul.f32 %v2882_v63, %v2194_v54 }
 0xd3a   : > { %v2203_v3 = vmul.f32 %v2202_v1, %v2187_v0 }
 0xd3c   : > { %v2204_v4 = vadd.f32 %v2203_v3, %v2188_v2 }
 0xd3e   : > { %v2205_v5 = vpack.c.bf16 %v2204_v4, %v2204_v4 }
 0xd40   : > { %2741 = vmatmul.mubr.msk.bf16.vlgmr.msra.gmra.mxu0 %vm1286_vm5, %v2205_v5 }
 0xe00   : > { %v2259_v6 = vpop.f32.mrf.mxu0 }
 0xe01   : > { %2266 = vst.msk [vmem:[%s3275_s9] sm:$0x1] %vm2265_vm0, %v2259_v6 }
 0xe02   : > { %v2742_v7 = vpop.f32.mrf.mxu0 }
 0xe04   : > { %v2262_v8 = vpop.f32.mrf.mxu0 }
 0xe06   : > { %v2743_v9 = vpop.f32.mrf.mxu0 }
 0xe07 PF: > { %s3671_s6 = sld [smem:[#allocation9_spill]]  ;;  %s2280_s16 = sshll.u32 %s3275_s9, 4  ;;  %s2281_s16 = int_to_ptr.vmem [resolvable:$true] %s2280_s16 }
 0xe08   : > { %s3673_s10 = sld [smem:[#allocation37_spill]]  ;;  %s3674_s7 = sand.u32 1, %s2951_s2  }
 0xe09   : > { %s2268_s1 = scalar_lea.sflag [#allocation4], %s3674_s7  ;;  %s2883_s29 = scalar_lea.vmem %s2281_s16, 16 }
 0xe0a   : > { %p2884_p2 = scmp.ne.s32.totalorder %s2281_s16, %s2883_s29  ;;  %s2989_s8 = smov [#allocation3]  }
 0xe0b   : > { %s2887_s25 = sshll.u32 %s2989_s8, 4  ;;  %s2888_s25 = int_to_ptr.vmem [resolvable:$false] %s2887_s25 }
 0xe0c   : > { %p2885_p4 = pnand %p2884_p2, %p3169_p3  ;;  %s2889_s23 = scalar_lea.vmem %s2888_s25, 32 }
 0xe0d   : > { %s2587_s4 = sshll.u32 %s3671_s6, 4  ;;  %p2890_p6 = scmp.lt.s32.totalorder %s2281_s16, %s2888_s25 }
 0xe0e   : > { %s2278_s3 = scalar_lea.hbm %s3673_s10, %s2587_s4  ;;  %p2886_p5 = pneg %p2885_p4 }
 0xe0f   : > { %p2891_p7 = scmp.lt.s32.totalorder %s2889_s23, %s2883_s29 }
 0xe11   : > { %p2892_p8 = por %p2891_p7, %p2890_p6 }
 0xe13   : > { %p2893_p10 = pnand %p2892_p8, %p2886_p5 }
 0xe15   : > { %2896 = shalt.err (!%p2893_p10)
}
 0xe16   : > { %s2897_s12 = scalar_lea.hbm %s2278_s3, 16  ;;  %s2901_s22 = scalar_lea.hbm %s3673_s10, 32 }
 0xe17   : > { %p2898_p11 = scmp.ne.s32.totalorder %s2278_s3, %s2897_s12  ;;  %p2902_p0 = scmp.lt.s32.totalorder %s2278_s3, %s3673_s10 }
 0xe18   : > { %p2903_p1 = scmp.lt.s32.totalorder %s2901_s22, %s2897_s12 }
 0xe19   : > { %p2899_p12 = pnand %p2898_p11, %p3169_p3 }
 0xe1a   : > { %p2904_p2 = por %p2903_p1, %p2902_p0 }
 0xe1b   : > { %p2900_p13 = pneg %p2899_p12 }
 0xe1d   : > { %p2905_p4 = pnand %p2904_p2, %p2900_p13 }
 0xe1f   : > { %2908 = shalt.err (!%p2905_p4)
}
 0xe20   : > { %2744 = dma.vmem_to_hbm [thread:$0]  (%p3169_p3), %s2281_s16, 16, %s2278_s3, %s2268_s1  }
 0xe21 PF: > { %s3675_s27 = sld [smem:[#allocation12_spill]] }
 0xe22   : > { %s3676_s6 = sld [smem:[#allocation6_spill]] }
 0xe27   : > { %p2750_p5 = scmp.ge.s32.totalorder %s3675_s27, 2 }
 0xe28   : > { %s2292_s26 = sand.u32 1, %s3676_s6  }
 0xe29   : > { %p2747_p6 = pnand %p2750_p5, %p3179_p9  ;;  %s2293_s14 = scalar_lea.sflag [#allocation4], %s2292_s26 }
 0xe2b   : > { %p2748_p7 = pneg %p2747_p6 }
 0xe2d   : > { %2942 = dma.done.wait (%p2748_p7), %s2293_s14, 16  }
 0xe2e   : > { %2944 = vsyncadd (%p2748_p7), %s2293_s14, 4294967280  ;;  %s38_s1 = sadd.s32 1, %s3675_s27   ;;  %s3678_s7 = sld [smem:[#allocation7_spill]] }
 0xe2f   : > { %p35_p8 = scmp.ge.s32.totalorder %s38_s1, 6   ;;  %s3679_s6 = sld [smem:[#allocation17_spill]] }
 0xe30   : > { %s3680_s30 = sld [smem:[#allocation10_spill]]  ;;  %s3684_s29 = smov %s2951_s2 }
 0xe31   : > { %s3681_s20 = sld [smem:[#allocation11_spill]] }
 0xe32   : > { %s3682_s3 = sld [smem:[#allocation13_spill]] }
 0xe33   : > { %s3683_s26 = sld [smem:[#allocation15_spill]]  ;;  %37 = sbr.rel (!%p35_p8) target bundleno = 25 (0x19), region = 211 }
 0xe34   : > { %s3685_s2 = smov %s3678_s7 }
 0xe37   : > { %s3686_s7 = smov %s3681_s20 }
 0xe38   :  { %2297 = vsyncpa [#allocation4], 1 }
 0xe39   :  { %2299 = vsyncpa [#allocation4 + $0x1], 1 }

</bundles_post_ra>
